<compile_context>
chip_gen: v7x
topology: tpu7x:2x2x1
jax: 0.10.0
libtpu: 0.0.40
codegen_flags: <defaults>
</compile_context>

<pallas_src>
import functools

import jax
import jax.numpy as jnp
import numpy as np
from jax import lax
from jax.experimental import pallas as pl
from jax.experimental.pallas import tpu as pltpu


def _round_up(x, m):
    return (x + m - 1) // m * m


def _fused_conv_kernel(x_ref, w_ref, b_ref, o_ref, *, k1, k2, img_w, tile_p):
    """One grid step = one (batch item, output-row-tile) pair.

    x_ref : [P_in, C]        zero-padded row-major flattened NHWC image; its block
                             index only depends on the batch axis, so it stays
                             resident in VMEM across the P-tile axis.
    w_ref : [k1*k2, C, Fpad] per-tap composed (enc @ dec) weights, F lane-padded.
    b_ref : [1, Fpad]        decoder bias (lane-padded).
    o_ref : [TP, Fpad]       output tile (lane-dense -> unmasked stores).
    """
    i = pl.program_id(1)
    base = pl.multiple_of(i * tile_p, tile_p)

    acc = jnp.zeros(o_ref.shape, jnp.float32)
    # Static unroll over the k1*k2 kernel taps: each tap is a constant row shift
    # of the flattened image followed by a [TP, C] x [C, Fpad] matmul.
    for kh in range(k1):
        for kw in range(k2):
            tap = kh * k2 + kw
            xs = x_ref[pl.ds(base + kh * img_w + kw, tile_p), :]
            acc = acc + jnp.dot(xs, w_ref[tap],
                                preferred_element_type=jnp.float32)

    # Bias fused into the single (lane-dense) output store.
    o_ref[...] = (acc + b_ref[...]).astype(o_ref.dtype)


@functools.partial(jax.jit, static_argnames=("groups", "tile_p"))
def projected_module_forward(x_nchw, w_enc, w_dec, bias, *, groups, tile_p=512):
    """forward(x) = decoding(encoding(x)) for the projected Conv2d module.

    x_nchw : [N, C, H, W]        input (NCHW, PyTorch convention)
    w_enc  : [G*J, C//G, k1, k2] encoding weight (grouped conv, OIHW)
    w_dec  : [F, G*J, 1, 1]      decoding weight (1x1 conv, OIHW)
    bias   : [F]                 decoding bias
    """
    n, c, h, w = x_nchw.shape
    gj, cg, k1, k2 = w_enc.shape
    g = groups
    j = gj // g
    f = w_dec.shape[0]
    hp, wp = h - k1 + 1, w - k2 + 1

    # --- fold decoder (1x1) into encoder: per-tap composed weights [k1*k2, C, F]
    w_enc_g = w_enc.reshape(g, j, cg, k1, k2)               # [G, J, Cg, k1, k2]
    w_dec_g = w_dec[:, :, 0, 0].reshape(f, g, j)            # [F, G, J]
    w_taps = jnp.einsum("fgj,gjckl->klgcf", w_dec_g, w_enc_g)
    w_taps = w_taps.reshape(k1 * k2, g * cg, f)             # channel order = g-major

    # --- lane-dense output: pad F up to a multiple of 128, slice after the call
    fpad = _round_up(f, 128)
    w_taps = jnp.pad(w_taps, ((0, 0), (0, 0), (0, fpad - f))).astype(x_nchw.dtype)
    bias2d = jnp.pad(bias, (0, fpad - f)).reshape(1, fpad).astype(jnp.float32)

    # --- flatten the NHWC image row-major; zero-pad rows so every shifted slice
    #     (tap offset up to (k1-1)*W + (k2-1)) stays in bounds.
    # TODO(synk): keep the surrounding model NHWC end-to-end to drop this
    # NCHW<->NHWC transpose pair at the module boundary.
    p_img = h * w
    tp = min(tile_p, _round_up(p_img, 8))
    num_tiles = pl.cdiv(p_img, tp)
    p_pad = num_tiles * tp
    halo = (k1 - 1) * w + (k2 - 1)
    p_in = p_pad + halo

    x_nhwc = jnp.transpose(x_nchw, (0, 2, 3, 1))            # [N, H, W, C]
    x_flat = x_nhwc.reshape(n, p_img, c)
    x_flat = jnp.pad(x_flat, ((0, 0), (0, p_in - p_img), (0, 0)))

    kernel = functools.partial(_fused_conv_kernel,
                               k1=k1, k2=k2, img_w=w, tile_p=tp)

    out_flat = pl.pallas_call(
        kernel,
        out_shape=jax.ShapeDtypeStruct((n, p_pad, fpad), x_nchw.dtype),
        grid_spec=pltpu.PrefetchScalarGridSpec(
            num_scalar_prefetch=0,
            grid=(n, num_tiles),
            in_specs=[
                # Whole per-batch image block, resident across the P-tile axis.
                # TODO(synk): for very large H*W*C (block > ~16 MiB) switch this
                # to a halo'd manual DMA (memory_space=pl.ANY + make_async_copy).
                pl.BlockSpec((None, p_in, c), lambda b, i: (b, 0, 0)),
                pl.BlockSpec((k1 * k2, c, fpad), lambda b, i: (0, 0, 0)),
                pl.BlockSpec((1, fpad), lambda b, i: (0, 0)),
            ],
            out_specs=pl.BlockSpec((None, tp, fpad), lambda b, i: (b, i, 0)),
        ),
        compiler_params=pltpu.CompilerParams(
            dimension_semantics=("parallel", "parallel"),
            vmem_limit_bytes=48 * 1024 * 1024,   # headroom under v7x's 64 MiB VMEM
        ),
    )(x_flat, w_taps, bias2d)

    # Strip F padding + invalid spatial columns/rows, go back to NCHW.
    out = out_flat[:, :p_img, :f].reshape(n, h, w, f)[:, :hp, :wp, :]
    return jnp.transpose(out, (0, 3, 1, 2))


def _reference_forward(x_nchw, w_enc, w_dec, bias, groups):
    """Pure-JAX reference: grouped conv followed by 1x1 conv (NCHW/OIHW)."""
    enc = lax.conv_general_dilated(
        x_nchw, w_enc, window_strides=(1, 1), padding="VALID",
        dimension_numbers=("NCHW", "OIHW", "NCHW"),
        feature_group_count=groups)
    dec = lax.conv_general_dilated(
        enc, w_dec, window_strides=(1, 1), padding="VALID",
        dimension_numbers=("NCHW", "OIHW", "NCHW"))
    return dec + bias[None, :, None, None]


if __name__ == "__main__":
    # Small, deterministic example consistent with the module's __init__:
    #   original conv: in_channels C=4, out_channels F=8, kernel 3x3, groups=1
    #   decomposition: G=2 groups, rank J=3 per group
    #     w_enc (per group): [J, C/G, 3, 3] -> concatenated [G*J, C/G, 3, 3]
    #     w_dec (per group): [F, J, 1, 1]   -> concatenated [F, G*J, 1, 1]
    N, C, H, W = 2, 4, 16, 16
    F, G, J = 8, 2, 3
    K1, K2 = 3, 3

    key = jax.random.PRNGKey(0)
    kx, ke, kd, kb = jax.random.split(key, 4)
    x = jax.random.normal(kx, (N, C, H, W), dtype=jnp.float32)
    w_enc = jax.random.normal(ke, (G * J, C // G, K1, K2), dtype=jnp.float32) * 0.1
    w_dec = jax.random.normal(kd, (F, G * J, 1, 1), dtype=jnp.float32) * 0.1
    bias = jax.random.normal(kb, (F,), dtype=jnp.float32) * 0.1

    out = projected_module_forward(x, w_enc, w_dec, bias, groups=G)
    out = jax.block_until_ready(out)

    ref = _reference_forward(x, w_enc, w_dec, bias, G)
    ref = jax.block_until_ready(ref)

    np.testing.assert_allclose(np.asarray(out), np.asarray(ref), rtol=1e-4, atol=1e-4)
    print("KERNEL_OK")
</pallas_src>

<mosaic_0001>
module attributes {stable_mosaic.version = 11 : i64} {
  func.func @_fused_conv_kernel(%arg0: i32, %arg1: i32, %arg2: memref<1x290x4xf32, #tpu.memory_space<vmem>>, %arg3: memref<9x4x128xf32, #tpu.memory_space<vmem>>, %arg4: memref<1x128xf32, #tpu.memory_space<vmem>>, %arg5: memref<1x256x128xf32, #tpu.memory_space<vmem>>) attributes {dimension_semantics = [#tpu.dimension_semantics<parallel>, #tpu.dimension_semantics<parallel>], iteration_bounds = array<i64: 2, 1>, scalar_prefetch = 0 : i64, scratch_operands = 0 : i64, tpu.core_type = #tpu.core_type<tc>, window_params = [{transform_indices = @transform_0, window_bounds = array<i64: 1, 290, 4>}, {pipeline_mode = #tpu.pipeline_mode<synchronous>, transform_indices = @transform_1, window_bounds = array<i64: 9, 4, 128>}, {pipeline_mode = #tpu.pipeline_mode<synchronous>, transform_indices = @transform_2, window_bounds = array<i64: 1, 128>}, {transform_indices = @transform_3, window_bounds = array<i64: 1, 256, 128>}]} {
    %c256_i32 = arith.constant 256 : i32
    %0 = arith.muli %arg1, %c256_i32 : i32
    %1 = tpu.assume_multiple %0, 256 : i32
    %cst = arith.constant 0.000000e+00 : f32
    %2 = vector.broadcast %cst : f32 to vector<256x128xf32>
    %c0_i32 = arith.constant 0 : i32
    %3 = arith.addi %1, %c0_i32 : i32
    %c0_i32_0 = arith.constant 0 : i32
    %4 = arith.addi %3, %c0_i32_0 : i32
    %c0 = arith.constant 0 : index
    %5 = arith.index_cast %4 : i32 to index
    %c0_1 = arith.constant 0 : index
    %6 = vector.load %arg2[%c0, %5, %c0_1] : memref<1x290x4xf32, #tpu.memory_space<vmem>>, vector<1x256x4xf32>
    %7 = vector.shape_cast %6 : vector<1x256x4xf32> to vector<256x4xf32>
    %c0_2 = arith.constant 0 : index
    %c0_3 = arith.constant 0 : index
    %c0_4 = arith.constant 0 : index
    %8 = vector.load %arg3[%c0_2, %c0_3, %c0_4] : memref<9x4x128xf32, #tpu.memory_space<vmem>>, vector<1x4x128xf32>
    %9 = vector.shape_cast %8 : vector<1x4x128xf32> to vector<4x128xf32>
    %cst_5 = arith.constant dense<0.000000e+00> : vector<256x128xf32>
    %10 = tpu.matmul %7, %9, %cst_5 {dimension_numbers = #tpu.dot_dimension_numbers<[1], [0], [0], [1], [0, 0, 1, 1], [], []>} : vector<256x4xf32>, vector<4x128xf32>, vector<256x128xf32> -> vector<256x128xf32>
    %11 = arith.addf %2, %10 : vector<256x128xf32>
    %c0_i32_6 = arith.constant 0 : i32
    %12 = arith.addi %1, %c0_i32_6 : i32
    %c1_i32 = arith.constant 1 : i32
    %13 = arith.addi %12, %c1_i32 : i32
    %c0_7 = arith.constant 0 : index
    %14 = arith.index_cast %13 : i32 to index
    %c0_8 = arith.constant 0 : index
    %15 = vector.load %arg2[%c0_7, %14, %c0_8] : memref<1x290x4xf32, #tpu.memory_space<vmem>>, vector<1x256x4xf32>
    %16 = vector.shape_cast %15 : vector<1x256x4xf32> to vector<256x4xf32>
    %c1 = arith.constant 1 : index
    %c0_9 = arith.constant 0 : index
    %c0_10 = arith.constant 0 : index
    %17 = vector.load %arg3[%c1, %c0_9, %c0_10] : memref<9x4x128xf32, #tpu.memory_space<vmem>>, vector<1x4x128xf32>
    %18 = vector.shape_cast %17 : vector<1x4x128xf32> to vector<4x128xf32>
    %cst_11 = arith.constant dense<0.000000e+00> : vector<256x128xf32>
    %19 = tpu.matmul %16, %18, %cst_11 {dimension_numbers = #tpu.dot_dimension_numbers<[1], [0], [0], [1], [0, 0, 1, 1], [], []>} : vector<256x4xf32>, vector<4x128xf32>, vector<256x128xf32> -> vector<256x128xf32>
    %20 = arith.addf %11, %19 : vector<256x128xf32>
    %c0_i32_12 = arith.constant 0 : i32
    %21 = arith.addi %1, %c0_i32_12 : i32
    %c2_i32 = arith.constant 2 : i32
    %22 = arith.addi %21, %c2_i32 : i32
    %c0_13 = arith.constant 0 : index
    %23 = arith.index_cast %22 : i32 to index
    %c0_14 = arith.constant 0 : index
    %24 = vector.load %arg2[%c0_13, %23, %c0_14] : memref<1x290x4xf32, #tpu.memory_space<vmem>>, vector<1x256x4xf32>
    %25 = vector.shape_cast %24 : vector<1x256x4xf32> to vector<256x4xf32>
    %c2 = arith.constant 2 : index
    %c0_15 = arith.constant 0 : index
    %c0_16 = arith.constant 0 : index
    %26 = vector.load %arg3[%c2, %c0_15, %c0_16] : memref<9x4x128xf32, #tpu.memory_space<vmem>>, vector<1x4x128xf32>
    %27 = vector.shape_cast %26 : vector<1x4x128xf32> to vector<4x128xf32>
    %cst_17 = arith.constant dense<0.000000e+00> : vector<256x128xf32>
    %28 = tpu.matmul %25, %27, %cst_17 {dimension_numbers = #tpu.dot_dimension_numbers<[1], [0], [0], [1], [0, 0, 1, 1], [], []>} : vector<256x4xf32>, vector<4x128xf32>, vector<256x128xf32> -> vector<256x128xf32>
    %29 = arith.addf %20, %28 : vector<256x128xf32>
    %c16_i32 = arith.constant 16 : i32
    %30 = arith.addi %1, %c16_i32 : i32
    %c0_i32_18 = arith.constant 0 : i32
    %31 = arith.addi %30, %c0_i32_18 : i32
    %c0_19 = arith.constant 0 : index
    %32 = arith.index_cast %31 : i32 to index
    %c0_20 = arith.constant 0 : index
    %33 = vector.load %arg2[%c0_19, %32, %c0_20] : memref<1x290x4xf32, #tpu.memory_space<vmem>>, vector<1x256x4xf32>
    %34 = vector.shape_cast %33 : vector<1x256x4xf32> to vector<256x4xf32>
    %c3 = arith.constant 3 : index
    %c0_21 = arith.constant 0 : index
    %c0_22 = arith.constant 0 : index
    %35 = vector.load %arg3[%c3, %c0_21, %c0_22] : memref<9x4x128xf32, #tpu.memory_space<vmem>>, vector<1x4x128xf32>
    %36 = vector.shape_cast %35 : vector<1x4x128xf32> to vector<4x128xf32>
    %cst_23 = arith.constant dense<0.000000e+00> : vector<256x128xf32>
    %37 = tpu.matmul %34, %36, %cst_23 {dimension_numbers = #tpu.dot_dimension_numbers<[1], [0], [0], [1], [0, 0, 1, 1], [], []>} : vector<256x4xf32>, vector<4x128xf32>, vector<256x128xf32> -> vector<256x128xf32>
    %38 = arith.addf %29, %37 : vector<256x128xf32>
    %c16_i32_24 = arith.constant 16 : i32
    %39 = arith.addi %1, %c16_i32_24 : i32
    %c1_i32_25 = arith.constant 1 : i32
    %40 = arith.addi %39, %c1_i32_25 : i32
    %c0_26 = arith.constant 0 : index
    %41 = arith.index_cast %40 : i32 to index
    %c0_27 = arith.constant 0 : index
    %42 = vector.load %arg2[%c0_26, %41, %c0_27] : memref<1x290x4xf32, #tpu.memory_space<vmem>>, vector<1x256x4xf32>
    %43 = vector.shape_cast %42 : vector<1x256x4xf32> to vector<256x4xf32>
    %c4 = arith.constant 4 : index
    %c0_28 = arith.constant 0 : index
    %c0_29 = arith.constant 0 : index
    %44 = vector.load %arg3[%c4, %c0_28, %c0_29] : memref<9x4x128xf32, #tpu.memory_space<vmem>>, vector<1x4x128xf32>
    %45 = vector.shape_cast %44 : vector<1x4x128xf32> to vector<4x128xf32>
    %cst_30 = arith.constant dense<0.000000e+00> : vector<256x128xf32>
    %46 = tpu.matmul %43, %45, %cst_30 {dimension_numbers = #tpu.dot_dimension_numbers<[1], [0], [0], [1], [0, 0, 1, 1], [], []>} : vector<256x4xf32>, vector<4x128xf32>, vector<256x128xf32> -> vector<256x128xf32>
    %47 = arith.addf %38, %46 : vector<256x128xf32>
    %c16_i32_31 = arith.constant 16 : i32
    %48 = arith.addi %1, %c16_i32_31 : i32
    %c2_i32_32 = arith.constant 2 : i32
    %49 = arith.addi %48, %c2_i32_32 : i32
    %c0_33 = arith.constant 0 : index
    %50 = arith.index_cast %49 : i32 to index
    %c0_34 = arith.constant 0 : index
    %51 = vector.load %arg2[%c0_33, %50, %c0_34] : memref<1x290x4xf32, #tpu.memory_space<vmem>>, vector<1x256x4xf32>
    %52 = vector.shape_cast %51 : vector<1x256x4xf32> to vector<256x4xf32>
    %c5 = arith.constant 5 : index
    %c0_35 = arith.constant 0 : index
    %c0_36 = arith.constant 0 : index
    %53 = vector.load %arg3[%c5, %c0_35, %c0_36] : memref<9x4x128xf32, #tpu.memory_space<vmem>>, vector<1x4x128xf32>
    %54 = vector.shape_cast %53 : vector<1x4x128xf32> to vector<4x128xf32>
    %cst_37 = arith.constant dense<0.000000e+00> : vector<256x128xf32>
    %55 = tpu.matmul %52, %54, %cst_37 {dimension_numbers = #tpu.dot_dimension_numbers<[1], [0], [0], [1], [0, 0, 1, 1], [], []>} : vector<256x4xf32>, vector<4x128xf32>, vector<256x128xf32> -> vector<256x128xf32>
    %56 = arith.addf %47, %55 : vector<256x128xf32>
    %c32_i32 = arith.constant 32 : i32
    %57 = arith.addi %1, %c32_i32 : i32
    %c0_i32_38 = arith.constant 0 : i32
    %58 = arith.addi %57, %c0_i32_38 : i32
    %c0_39 = arith.constant 0 : index
    %59 = arith.index_cast %58 : i32 to index
    %c0_40 = arith.constant 0 : index
    %60 = vector.load %arg2[%c0_39, %59, %c0_40] : memref<1x290x4xf32, #tpu.memory_space<vmem>>, vector<1x256x4xf32>
    %61 = vector.shape_cast %60 : vector<1x256x4xf32> to vector<256x4xf32>
    %c6 = arith.constant 6 : index
    %c0_41 = arith.constant 0 : index
    %c0_42 = arith.constant 0 : index
    %62 = vector.load %arg3[%c6, %c0_41, %c0_42] : memref<9x4x128xf32, #tpu.memory_space<vmem>>, vector<1x4x128xf32>
    %63 = vector.shape_cast %62 : vector<1x4x128xf32> to vector<4x128xf32>
    %cst_43 = arith.constant dense<0.000000e+00> : vector<256x128xf32>
    %64 = tpu.matmul %61, %63, %cst_43 {dimension_numbers = #tpu.dot_dimension_numbers<[1], [0], [0], [1], [0, 0, 1, 1], [], []>} : vector<256x4xf32>, vector<4x128xf32>, vector<256x128xf32> -> vector<256x128xf32>
    %65 = arith.addf %56, %64 : vector<256x128xf32>
    %c32_i32_44 = arith.constant 32 : i32
    %66 = arith.addi %1, %c32_i32_44 : i32
    %c1_i32_45 = arith.constant 1 : i32
    %67 = arith.addi %66, %c1_i32_45 : i32
    %c0_46 = arith.constant 0 : index
    %68 = arith.index_cast %67 : i32 to index
    %c0_47 = arith.constant 0 : index
    %69 = vector.load %arg2[%c0_46, %68, %c0_47] : memref<1x290x4xf32, #tpu.memory_space<vmem>>, vector<1x256x4xf32>
    %70 = vector.shape_cast %69 : vector<1x256x4xf32> to vector<256x4xf32>
    %c7 = arith.constant 7 : index
    %c0_48 = arith.constant 0 : index
    %c0_49 = arith.constant 0 : index
    %71 = vector.load %arg3[%c7, %c0_48, %c0_49] : memref<9x4x128xf32, #tpu.memory_space<vmem>>, vector<1x4x128xf32>
    %72 = vector.shape_cast %71 : vector<1x4x128xf32> to vector<4x128xf32>
    %cst_50 = arith.constant dense<0.000000e+00> : vector<256x128xf32>
    %73 = tpu.matmul %70, %72, %cst_50 {dimension_numbers = #tpu.dot_dimension_numbers<[1], [0], [0], [1], [0, 0, 1, 1], [], []>} : vector<256x4xf32>, vector<4x128xf32>, vector<256x128xf32> -> vector<256x128xf32>
    %74 = arith.addf %65, %73 : vector<256x128xf32>
    %c32_i32_51 = arith.constant 32 : i32
    %75 = arith.addi %1, %c32_i32_51 : i32
    %c2_i32_52 = arith.constant 2 : i32
    %76 = arith.addi %75, %c2_i32_52 : i32
    %c0_53 = arith.constant 0 : index
    %77 = arith.index_cast %76 : i32 to index
    %c0_54 = arith.constant 0 : index
    %78 = vector.load %arg2[%c0_53, %77, %c0_54] : memref<1x290x4xf32, #tpu.memory_space<vmem>>, vector<1x256x4xf32>
    %79 = vector.shape_cast %78 : vector<1x256x4xf32> to vector<256x4xf32>
    %c8 = arith.constant 8 : index
    %c0_55 = arith.constant 0 : index
    %c0_56 = arith.constant 0 : index
    %80 = vector.load %arg3[%c8, %c0_55, %c0_56] : memref<9x4x128xf32, #tpu.memory_space<vmem>>, vector<1x4x128xf32>
    %81 = vector.shape_cast %80 : vector<1x4x128xf32> to vector<4x128xf32>
    %cst_57 = arith.constant dense<0.000000e+00> : vector<256x128xf32>
    %82 = tpu.matmul %79, %81, %cst_57 {dimension_numbers = #tpu.dot_dimension_numbers<[1], [0], [0], [1], [0, 0, 1, 1], [], []>} : vector<256x4xf32>, vector<4x128xf32>, vector<256x128xf32> -> vector<256x128xf32>
    %83 = arith.addf %74, %82 : vector<256x128xf32>
    %c0_58 = arith.constant 0 : index
    %c0_59 = arith.constant 0 : index
    %84 = vector.load %arg4[%c0_58, %c0_59] : memref<1x128xf32, #tpu.memory_space<vmem>>, vector<1x128xf32>
    %85 = vector.broadcast %84 : vector<1x128xf32> to vector<256x128xf32>
    %86 = arith.addf %83, %85 : vector<256x128xf32>
    %c0_60 = arith.constant 0 : index
    %c0_61 = arith.constant 0 : index
    %c0_62 = arith.constant 0 : index
    %87 = vector.load %arg5[%c0_60, %c0_61, %c0_62] : memref<1x256x128xf32, #tpu.memory_space<vmem>>, vector<1x256x128xf32>
    %88 = vector.shape_cast %87 : vector<1x256x128xf32> to vector<256x128xf32>
    %89 = vector.shape_cast %86 : vector<256x128xf32> to vector<1x256x128xf32>
    tpu.vector_store %arg5[%c0_60, %c0_61, %c0_62], %89 {strides = array<i32>} : memref<1x256x128xf32, #tpu.memory_space<vmem>>, vector<1x256x128xf32>,
    return
  }
  func.func @transform_0(%arg0: i32, %arg1: i32) -> (i32, i32, i32) {
    %c0_i32 = arith.constant 0 : i32
    %c0_i32_0 = arith.constant 0 : i32
    %c0_i32_1 = arith.constant 0 : i32
    return %arg0, %c0_i32, %c0_i32_0 : i32, i32, i32
  }
  func.func @transform_1(%arg0: i32, %arg1: i32) -> (i32, i32, i32) {
    %c0_i32 = arith.constant 0 : i32
    %c0_i32_0 = arith.constant 0 : i32
    %c0_i32_1 = arith.constant 0 : i32
    %c0_i32_2 = arith.constant 0 : i32
    return %c0_i32, %c0_i32_0, %c0_i32_1 : i32, i32, i32
  }
  func.func @transform_2(%arg0: i32, %arg1: i32) -> (i32, i32) {
    %c0_i32 = arith.constant 0 : i32
    %c0_i32_0 = arith.constant 0 : i32
    %c0_i32_1 = arith.constant 0 : i32
    return %c0_i32, %c0_i32_0 : i32, i32
  }
  func.func @transform_3(%arg0: i32, %arg1: i32) -> (i32, i32, i32) {
    %c0_i32 = arith.constant 0 : i32
    %c0_i32_0 = arith.constant 0 : i32
    return %arg0, %arg1, %c0_i32 : i32, i32, i32
  }
}

</mosaic_0001>

<bundles_post_ra>
// kernel: projected_module_forward.1
= control target key start
LH: loop header
LB: loop body
LE: loop exit
PB: predicated region body
PF: predicated region fallthrough
CT: control target
= control target key end

     0   :  { %s5484_s12 = smov 0   ;;  %s5486_s13 = smov 0   ;;  %s6522_s0 = inlined_call_operand.vmem [shape: f32[2,290,4], index: 0, kind: input, shape index: {}]   ;;  %s6523_s1 = inlined_call_operand.vmem [shape: f32[9,4,128], index: 1, kind: input, shape index: {}]   ;;  %s6524_s2 = inlined_call_operand.vmem [shape: f32[1,128], index: 2, kind: input, shape index: {}]   ;;  %s6525_s3 = inlined_call_operand.vmem [shape: f32[2,256,128], index: 3, kind: output, shape index: {}]  }
   0x1   :  { %s5488_s14 = smov 0  }
   0x2 LB: > { %s25_s15 = sadd.s32 1, %s5458_s13  ;;  %p3841_p0 = scmp.ge.s32.totalorder %s5462_s14, 1  ;;  %s5462_s14 = sphi %s5488_s14, %s13_s14   ;;  %s5458_s13 = sphi %s5486_s13, %s6636_s13   ;;  %s5454_s12 = sphi %s5484_s12, %s6635_s12  }
   0x3   : > { %p27_p1 = scmp.ge.s32.totalorder %s25_s15, 2  ;;  %p151_p2 = scmp.lt.s32.totalorder %s5462_s14, 3 }
   0x5   : > { %s6638_s15 = smov (%p27_p1, %s25_s15), 0  ;;  %p152_p3 = pnand %p3841_p0, %p151_p2 }
   0x7   : > { %155 = sbr.rel (%p152_p3) target bundleno = 524 (0x20c), region = 32 }
   0xe   : > { %v3877_v0 = vld [vmem:[%s6523_s1 + $0x4] sm:$0xf]  ;;  %vm362_vm0 = vcmask 1043456   ;;  %v5508_v1 = vld [vmem:[%s6523_s1 + $0x10] sm:$0xf]  ;;  %p179_p4 = scmp.lt.s32.totalorder %s5454_s12, 1 }
   0xf   : > { %4707 = vmatprep.subr.msk.mxu1 %vm362_vm0, %v3877_v0  ;;  %4907 = vmatprep.subr.msk.mxu0 %vm362_vm0, %v5508_v1  ;;  %v228_v2 = vld [vmem:[%s6523_s1] sm:$0xf]  ;;  %v4174_v3 = vld [vmem:[%s6523_s1 + $0x14] sm:$0xf]  ;;  %vm265_vm1 = vcmask 31744  }
  0x10   : > { %4708 = vmatpush3.msk.msra.mxu1 %vm362_vm0, %v3877_v0  ;;  %4908 = vmatpush3.msk.msra.mxu0 %vm362_vm0, %v5508_v1  ;;  %s6640_s12 = smov (!%p179_p4, %s5454_s12), 1  ;;  %v4240_v9 = vld [vmem:[%s6523_s1 + $0x18] sm:$0xf]  ;;  %v5549_v10 = vld [vmem:[%s6523_s1 + $0x8] sm:$0xf] }
  0x11   : > { %4757 = vmatprep.subr.msk.mxu1 %vm362_vm0, %v228_v2  ;;  %4957 = vmatprep.subr.msk.mxu0 %vm362_vm0, %v4174_v3  ;;  %s5415_s24 = smul.u32 296, %s6640_s12  ;;  %v5668_v28 = vld [vmem:[%s6523_s1 + $0x1c] sm:$0xf]  ;;  %v5831_v61 = vld [vmem:[%s6523_s1 + $0xc] sm:$0xf]  ;;  %s4409_s11 = sshll.u32 %s6640_s12, 8 }
  0x12   : > { %s6446_s20 = scalar_lea.vmem %s6525_s3, %s4409_s11 }
  0x13   : > { %s5530_s27 = scalar_lea.vmem %s6522_s0, %s5415_s24 }
  0x14   : > { %v3845_v4 = vld [vmem:[%s5530_s27 + $0x1] sm:$0xff]  ;;  %v4076_v5 = vld [vmem:[%s5530_s27 + $0x11] sm:$0xff]  ;;  %v3846_v6 = vld [vmem:[%s5530_s27 + $0x9] sm:$0xff] }
  0x15   : > { %4709 = vmatprep.mubr.msk.f32.mxu1 %vm265_vm1, %v3845_v4  ;;  %4909 = vmatprep.mubr.msk.f32.mxu0 %vm265_vm1, %v4076_v5  ;;  %v4077_v7 = vld [vmem:[%s5530_s27 + $0x19] sm:$0xff]  ;;  %v5539_v8 = vld [vmem:[%s5530_s27 + $0x21] sm:$0xff]  ;;  %v5554_v11 = vld [vmem:[%s5530_s27 + $0x29] sm:$0xff] }
  0x16   : > { %4710 = vmatmul.mubr.msk.f32.vlgmr.msra.gmra.mrb[0].mxu1 %vm265_vm1, %v3846_v6  ;;  %4910 = vmatmul.mubr.msk.f32.vlgmr.msra.gmra.mrb[0].mxu0 %vm265_vm1, %v4077_v7  ;;  %v5560_v12 = vld [vmem:[%s5530_s27 + $0x31] sm:$0xff]  ;;  %v5573_v13 = vld [vmem:[%s5530_s27 + $0x39] sm:$0xff]  ;;  %v5576_v14 = vld [vmem:[%s5530_s27 + $0x41] sm:$0xff] }
  0x17   : > { %4758 = vmatpush3.msk.msra.mxu1 %vm362_vm0, %v228_v2  ;;  %4958 = vmatpush3.msk.msra.mxu0 %vm362_vm0, %v4174_v3  ;;  %v5587_v15 = vld [vmem:[%s5530_s27 + $0x49] sm:$0xff]  ;;  %v5590_v16 = vld [vmem:[%s5530_s27 + $0x51] sm:$0xff]  ;;  %v5601_v17 = vld [vmem:[%s5530_s27 + $0x59] sm:$0xff] }
  0x18   : > { %4712 = vmatprep.mubr.msk.f32.mxu1 %vm265_vm1, %v4076_v5  ;;  %4912 = vmatprep.mubr.msk.f32.mxu0 %vm265_vm1, %v5539_v8  ;;  %v5604_v18 = vld [vmem:[%s5530_s27 + $0x61] sm:$0xff]  ;;  %v5615_v19 = vld [vmem:[%s5530_s27 + $0x69] sm:$0xff]  ;;  %v5618_v20 = vld [vmem:[%s5530_s27 + $0x71] sm:$0xff] }
  0x19   : > { %5007 = vmatprep.subr.msk.mxu0 %vm362_vm0, %v4240_v9  ;;  %4807 = vmatprep.subr.msk.mxu1 %vm362_vm0, %v5549_v10  ;;  %v5629_v21 = vld [vmem:[%s5530_s27 + $0x79] sm:$0xff]  ;;  %v5632_v22 = vld [vmem:[%s5530_s27 + $0x81] sm:$0xff]  ;;  %v5643_v23 = vld [vmem:[%s5530_s27 + $0x89] sm:$0xff] }
  0x1a   : > { %4713 = vmatmul.mubr.msk.f32.gmra.mrb[2].mxu1 %vm265_vm1, %v4077_v7  ;;  %4913 = vmatmul.mubr.msk.f32.gmra.mrb[2].mxu0 %vm265_vm1, %v5554_v11  ;;  %v5646_v24 = vld [vmem:[%s5530_s27 + $0x12] sm:$0xff]  ;;  %v5657_v25 = vld [vmem:[%s5530_s27 + $0x1a] sm:$0xff]  ;;  %v5663_v27 = vld [vmem:[%s5530_s27 + $0x22] sm:$0xff] }
  0x1b   : > { %4715 = vmatprep.mubr.msk.f32.mxu1 %vm265_vm1, %v5539_v8  ;;  %4915 = vmatprep.mubr.msk.f32.mxu0 %vm265_vm1, %v5560_v12  ;;  %v5660_v26 = vld [vmem:[%s5530_s27 + $0x91] sm:$0xff]  ;;  %v5678_v29 = vld [vmem:[%s5530_s27 + $0x99] sm:$0xff]  ;;  %v5686_v31 = vld [vmem:[%s5530_s27 + $0xa1] sm:$0xff] }
  0x1c   : > { %6571 = vst [vmem:[#allocation2_spill] sm:$0xff] %v5678_v29  ;;  %v5681_v30 = vld [vmem:[%s5530_s27 + $0x2a] sm:$0xff]  ;;  %6572 = vst [vmem:[#allocation3_spill] sm:$0xff] %v5686_v31  ;;  %v5689_v32 = vld [vmem:[%s5530_s27 + $0x32] sm:$0xff] }
  0x1d   : > { %v5702_v33 = vld [vmem:[%s5530_s27 + $0xa9] sm:$0xff]  ;;  %v5705_v34 = vld [vmem:[%s5530_s27 + $0x3a] sm:$0xff]  ;;  %v5708_v35 = vld [vmem:[%s5530_s27 + $0xb1] sm:$0xff] }
  0x1e   : > { %4716 = vmatmul.mubr.msk.f32.gmra.mrb[4].mxu1 %vm265_vm1, %v5554_v11  ;;  %4916 = vmatmul.mubr.msk.f32.gmra.mrb[4].mxu0 %vm265_vm1, %v5573_v13  ;;  %6573 = vst [vmem:[#allocation4_spill] sm:$0xff] %v5702_v33  ;;  %6574 = vst [vmem:[#allocation5_spill] sm:$0xff] %v5708_v35  ;;  %v5711_v36 = vld [vmem:[%s5530_s27 + $0x42] sm:$0xff]  ;;  %v5722_v37 = vld [vmem:[%s5530_s27 + $0xb9] sm:$0xff] }
  0x1f   : > { %4718 = vmatprep.mubr.msk.f32.mxu1 %vm265_vm1, %v5560_v12  ;;  %4918 = vmatprep.mubr.msk.f32.mxu0 %vm265_vm1, %v5576_v14  ;;  %6575 = vst [vmem:[#allocation6_spill] sm:$0xff] %v5722_v37  ;;  %v5725_v38 = vld [vmem:[%s5530_s27 + $0x4a] sm:$0xff]  ;;  %v5728_v39 = vld [vmem:[%s5530_s27 + $0xc1] sm:$0xff]  ;;  %v5731_v40 = vld [vmem:[%s5530_s27 + $0x52] sm:$0xff] }
  0x20   : > { %6576 = vst [vmem:[#allocation7_spill] sm:$0xff] %v5728_v39  ;;  %v5742_v41 = vld [vmem:[%s5530_s27 + $0xc9] sm:$0xff]  ;;  %v5745_v42 = vld [vmem:[%s5530_s27 + $0x5a] sm:$0xff]  ;;  %v5748_v43 = vld [vmem:[%s5530_s27 + $0xd1] sm:$0xff] }
  0x21   : > { %6577 = vst [vmem:[#allocation8_spill] sm:$0xff] %v5742_v41  ;;  %6578 = vst [vmem:[#allocation9_spill] sm:$0xff] %v5748_v43  ;;  %v5751_v44 = vld [vmem:[%s5530_s27 + $0x62] sm:$0xff]  ;;  %v5762_v45 = vld [vmem:[%s5530_s27 + $0xd9] sm:$0xff] }
  0x22   : > { %4719 = vmatmul.mubr.msk.f32.gmra.mrb[6].mxu1 %vm265_vm1, %v5573_v13  ;;  %4919 = vmatmul.mubr.msk.f32.gmra.mrb[6].mxu0 %vm265_vm1, %v5587_v15  ;;  %6579 = vst [vmem:[#allocation10_spill] sm:$0xff] %v5762_v45  ;;  %v5765_v46 = vld [vmem:[%s5530_s27 + $0x6a] sm:$0xff]  ;;  %v5768_v47 = vld [vmem:[%s5530_s27 + $0xe1] sm:$0xff]  ;;  %v5771_v48 = vld [vmem:[%s5530_s27 + $0x72] sm:$0xff] }
  0x23   : > { %4721 = vmatprep.mubr.msk.f32.mxu1 %vm265_vm1, %v5576_v14  ;;  %4921 = vmatprep.mubr.msk.f32.mxu0 %vm265_vm1, %v5590_v16  ;;  %6580 = vst [vmem:[#allocation11_spill] sm:$0xff] %v5768_v47  ;;  %v5782_v49 = vld [vmem:[%s5530_s27 + $0xe9] sm:$0xff]  ;;  %v5785_v50 = vld [vmem:[%s5530_s27 + $0x7a] sm:$0xff]  ;;  %v5788_v51 = vld [vmem:[%s5530_s27 + $0xf1] sm:$0xff] }
  0x24   : > { %6581 = vst [vmem:[#allocation12_spill] sm:$0xff] %v5782_v49  ;;  %6582 = vst [vmem:[#allocation13_spill] sm:$0xff] %v5788_v51  ;;  %v5791_v52 = vld [vmem:[%s5530_s27 + $0x82] sm:$0xff]  ;;  %v5802_v53 = vld [vmem:[%s5530_s27 + $0xf9] sm:$0xff] }
  0x25   : > { %6583 = vst [vmem:[#allocation14_spill] sm:$0xff] %v5802_v53  ;;  %v5805_v54 = vld [vmem:[%s5530_s27 + $0x8a] sm:$0xff]  ;;  %v196_v55 = vld [vmem:[%s5530_s27] sm:$0xff]  ;;  %v5809_v56 = vld [vmem:[%s5530_s27 + $0x92] sm:$0xff] }
  0x26   : > { %4722 = vmatmul.mubr.msk.f32.gmra.mrb[8].mxu1 %vm265_vm1, %v5587_v15  ;;  %4922 = vmatmul.mubr.msk.f32.gmra.mrb[8].mxu0 %vm265_vm1, %v5601_v17  ;;  %v197_v57 = vld [vmem:[%s5530_s27 + $0x8] sm:$0xff]  ;;  %v5820_v58 = vld [vmem:[%s5530_s27 + $0x9a] sm:$0xff]  ;;  %v5823_v59 = vld [vmem:[%s5530_s27 + $0x10] sm:$0xff] }
  0x27   : > { %4724 = vmatprep.mubr.msk.f32.mxu1 %vm265_vm1, %v5590_v16  ;;  %4924 = vmatprep.mubr.msk.f32.mxu0 %vm265_vm1, %v5604_v18  ;;  %6584 = vst [vmem:[#allocation15_spill] sm:$0xff] %v5823_v59  ;;  %v5826_v60 = vld [vmem:[%s5530_s27 + $0xa2] sm:$0xff]  ;;  %v5841_v62 = vld [vmem:[%s5530_s27 + $0x18] sm:$0xff]  ;;  %v5844_v63 = vld [vmem:[%s5530_s27 + $0xaa] sm:$0xff] }
  0x28   : > { %6585 = vst [vmem:[#allocation16_spill] sm:$0xff] %v5841_v62  ;;  %v5849_v0 = vld [vmem:[%s5530_s27 + $0x20] sm:$0xff]  ;;  %v5852_v2 = vld [vmem:[%s5530_s27 + $0xb2] sm:$0xff]  ;;  %v5865_v3 = vld [vmem:[%s5530_s27 + $0x28] sm:$0xff] }
  0x29   : > { %6586 = vst [vmem:[#allocation17_spill] sm:$0xff] %v5849_v0  ;;  %6587 = vst [vmem:[#allocation18_spill] sm:$0xff] %v5865_v3  ;;  %v5868_v4 = vld [vmem:[%s5530_s27 + $0xba] sm:$0xff]  ;;  %v5871_v5 = vld [vmem:[%s5530_s27 + $0x30] sm:$0xff] }
  0x2a   : > { %4725 = vmatmul.mubr.msk.f32.gmra.mrb[10].mxu1 %vm265_vm1, %v5601_v17  ;;  %4925 = vmatmul.mubr.msk.f32.gmra.mrb[10].mxu0 %vm265_vm1, %v5615_v19  ;;  %6588 = vst [vmem:[#allocation19_spill] sm:$0xff] %v5871_v5  ;;  %v5874_v6 = vld [vmem:[%s5530_s27 + $0xc2] sm:$0xff]  ;;  %v5885_v7 = vld [vmem:[%s5530_s27 + $0x38] sm:$0xff] }
  0x2b   : > { %4727 = vmatprep.mubr.msk.f32.mxu1 %vm265_vm1, %v5604_v18  ;;  %4927 = vmatprep.mubr.msk.f32.mxu0 %vm265_vm1, %v5618_v20  ;;  %6589 = vst [vmem:[#allocation20_spill] sm:$0xff] %v5885_v7 }
  0x2e   : > { %4728 = vmatmul.mubr.msk.f32.gmra.mrb[12].mxu1 %vm265_vm1, %v5615_v19  ;;  %4928 = vmatmul.mubr.msk.f32.gmra.mrb[12].mxu0 %vm265_vm1, %v5629_v21 }
  0x2f   : > { %4730 = vmatprep.mubr.msk.f32.mxu1 %vm265_vm1, %v5618_v20  ;;  %4930 = vmatprep.mubr.msk.f32.mxu0 %vm265_vm1, %v5632_v22 }
  0x32   : > { %4731 = vmatmul.mubr.msk.f32.gmra.mrb[14].mxu1 %vm265_vm1, %v5629_v21  ;;  %4931 = vmatmul.mubr.msk.f32.gmra.mrb[14].mxu0 %vm265_vm1, %v5643_v23 }
  0x33   : > { %4733 = vmatprep.mubr.msk.f32.mxu1 %vm265_vm1, %v5632_v22  ;;  %4959 = vmatprep.mubr.msk.f32.mxu0 %vm265_vm1, %v5646_v24 }
  0x36   : > { %4734 = vmatmul.mubr.msk.f32.gmra.mrb[16].mxu1 %vm265_vm1, %v5643_v23  ;;  %4960 = vmatmul.mubr.msk.f32.vlgmr.msra.gmra.mrb[0].mxu0 %vm265_vm1, %v5657_v25 }
  0x37   : > { %5008 = vmatpush3.msk.msra.mxu0 %vm362_vm0, %v4240_v9  ;;  %4736 = vmatprep.mubr.msk.f32.mxu1 %vm265_vm1, %v5660_v26  ;;  %v5888_v9 = vld [vmem:[%s5530_s27 + $0xca] sm:$0xff] }
  0x38   : > { %4962 = vmatprep.mubr.msk.f32.mxu0 %vm265_vm1, %v5663_v27  ;;  %5057 = vmatprep.subr.msk.mxu0 %vm362_vm0, %v5668_v28 }
  0x3a   : > { %4737 = vmatmul.mubr.msk.f32.gmra.mrb[18].mxu1 %vm265_vm1, %v5678_v29  ;;  %4963 = vmatmul.mubr.msk.f32.gmra.mrb[2].mxu0 %vm265_vm1, %v5681_v30  ;;  %v5985_v29 = vld [vmem:[%s5530_s27 + $0x90] sm:$0xff] }
  0x3b   : > { %4739 = vmatprep.mubr.msk.f32.mxu1 %vm265_vm1, %v5686_v31  ;;  %4965 = vmatprep.mubr.msk.f32.mxu0 %vm265_vm1, %v5689_v32  ;;  %v5968_v31 = vld [vmem:[%s5530_s27 + $0x10a] sm:$0xff] }
  0x3c   : > { %6600 = vst [vmem:[#allocation31_spill] sm:$0xff] %v5968_v31 }
  0x3e   : > { %4740 = vmatmul.mubr.msk.f32.gmra.mrb[20].mxu1 %vm265_vm1, %v5702_v33  ;;  %4966 = vmatmul.mubr.msk.f32.gmra.mrb[4].mxu0 %vm265_vm1, %v5705_v34  ;;  %v5954_v33 = vld [vmem:[%s5530_s27 + $0x102] sm:$0xff] }
  0x3f   : > { %4742 = vmatprep.mubr.msk.f32.mxu1 %vm265_vm1, %v5708_v35  ;;  %4968 = vmatprep.mubr.msk.f32.mxu0 %vm265_vm1, %v5711_v36  ;;  %v5951_v35 = vld [vmem:[%s5530_s27 + $0x70] sm:$0xff]  ;;  %6598 = vst [vmem:[#allocation29_spill] sm:$0xff] %v5954_v33 }
  0x40   : > { %6597 = vst [vmem:[#allocation28_spill] sm:$0xff] %v5951_v35 }
  0x42   : > { %4743 = vmatmul.mubr.msk.f32.gmra.mrb[22].mxu1 %vm265_vm1, %v5722_v37  ;;  %4969 = vmatmul.mubr.msk.f32.gmra.mrb[6].mxu0 %vm265_vm1, %v5725_v38  ;;  %v5948_v37 = vld [vmem:[%s5530_s27 + $0xfa] sm:$0xff] }
  0x43   : > { %4745 = vmatprep.mubr.msk.f32.mxu1 %vm265_vm1, %v5728_v39  ;;  %4971 = vmatprep.mubr.msk.f32.mxu0 %vm265_vm1, %v5731_v40  ;;  %v5945_v39 = vld [vmem:[%s5530_s27 + $0x68] sm:$0xff]  ;;  %6596 = vst [vmem:[#allocation27_spill] sm:$0xff] %v5948_v37 }
  0x44   : > { %6595 = vst [vmem:[#allocation26_spill] sm:$0xff] %v5945_v39 }
  0x46   : > { %4746 = vmatmul.mubr.msk.f32.gmra.mrb[24].mxu1 %vm265_vm1, %v5742_v41  ;;  %4972 = vmatmul.mubr.msk.f32.gmra.mrb[8].mxu0 %vm265_vm1, %v5745_v42  ;;  %v5934_v41 = vld [vmem:[%s5530_s27 + $0xf2] sm:$0xff] }
  0x47   : > { %4748 = vmatprep.mubr.msk.f32.mxu1 %vm265_vm1, %v5748_v43  ;;  %4974 = vmatprep.mubr.msk.f32.mxu0 %vm265_vm1, %v5751_v44  ;;  %v5931_v43 = vld [vmem:[%s5530_s27 + $0x60] sm:$0xff] }
  0x48   : > { %6594 = vst [vmem:[#allocation25_spill] sm:$0xff] %v5931_v43 }
  0x4a   : > { %4749 = vmatmul.mubr.msk.f32.gmra.mrb[26].mxu1 %vm265_vm1, %v5762_v45  ;;  %4975 = vmatmul.mubr.msk.f32.gmra.mrb[10].mxu0 %vm265_vm1, %v5765_v46  ;;  %v5928_v45 = vld [vmem:[%s5530_s27 + $0xea] sm:$0xff] }
  0x4b   : > { %4751 = vmatprep.mubr.msk.f32.mxu1 %vm265_vm1, %v5768_v47  ;;  %4977 = vmatprep.mubr.msk.f32.mxu0 %vm265_vm1, %v5771_v48  ;;  %v5925_v47 = vld [vmem:[%s5530_s27 + $0x58] sm:$0xff] }
  0x4c   : > { %6593 = vst [vmem:[#allocation24_spill] sm:$0xff] %v5925_v47 }
  0x4e   : > { %4752 = vmatmul.mubr.msk.f32.gmra.mrb[28].mxu1 %vm265_vm1, %v5782_v49  ;;  %4978 = vmatmul.mubr.msk.f32.gmra.mrb[12].mxu0 %vm265_vm1, %v5785_v50  ;;  %v5914_v49 = vld [vmem:[%s5530_s27 + $0xe2] sm:$0xff] }
  0x4f   : > { %4754 = vmatprep.mubr.msk.f32.mxu1 %vm265_vm1, %v5788_v51  ;;  %4980 = vmatprep.mubr.msk.f32.mxu0 %vm265_vm1, %v5791_v52  ;;  %v5911_v51 = vld [vmem:[%s5530_s27 + $0x50] sm:$0xff] }
  0x50   : > { %6592 = vst [vmem:[#allocation23_spill] sm:$0xff] %v5911_v51 }
  0x52   : > { %4755 = vmatmul.mubr.msk.f32.gmra.mrb[30].mxu1 %vm265_vm1, %v5802_v53  ;;  %4981 = vmatmul.mubr.msk.f32.gmra.mrb[14].mxu0 %vm265_vm1, %v5805_v54  ;;  %v5908_v53 = vld [vmem:[%s5530_s27 + $0xda] sm:$0xff] }
  0x53   : > { %4759 = vmatprep.mubr.msk.f32.mxu1 %vm265_vm1, %v196_v55  ;;  %4983 = vmatprep.mubr.msk.f32.mxu0 %vm265_vm1, %v5809_v56  ;;  %v5894_v55 = vld [vmem:[%s5530_s27 + $0xd2] sm:$0xff] }
  0x56   : > { %4760 = vmatmul.mubr.msk.f32.vlgmr.msra.gmra.mrb[0].mxu1 %vm265_vm1, %v197_v57  ;;  %4984 = vmatmul.mubr.msk.f32.gmra.mrb[16].mxu0 %vm265_vm1, %v5820_v58  ;;  %v5905_v57 = vld [vmem:[%s5530_s27 + $0x48] sm:$0xff] }
  0x57   : > { %4808 = vmatpush3.msk.msra.mxu1 %vm362_vm0, %v5549_v10  ;;  %4762 = vmatprep.mubr.msk.f32.mxu1 %vm265_vm1, %v5823_v59  ;;  %v5891_v10 = vld [vmem:[%s5530_s27 + $0x40] sm:$0xff]  ;;  %6591 = vst [vmem:[#allocation22_spill] sm:$0xff] %v5905_v57 }
  0x58   : > { %4986 = vmatprep.mubr.msk.f32.mxu0 %vm265_vm1, %v5826_v60  ;;  %4857 = vmatprep.subr.msk.mxu1 %vm362_vm0, %v5831_v61  ;;  %6590 = vst [vmem:[#allocation21_spill] sm:$0xff] %v5891_v10  ;;  %v5971_v59 = vld [vmem:[%s5530_s27 + $0x80] sm:$0xff] }
  0x5a   : > { %4763 = vmatmul.mubr.msk.f32.gmra.mrb[2].mxu1 %vm265_vm1, %v5841_v62  ;;  %4987 = vmatmul.mubr.msk.f32.gmra.mrb[18].mxu0 %vm265_vm1, %v5844_v63  ;;  %v5965_v62 = vld [vmem:[%s5530_s27 + $0x78] sm:$0xff] }
  0x5b   : > { %4765 = vmatprep.mubr.msk.f32.mxu1 %vm265_vm1, %v5849_v0  ;;  %4989 = vmatprep.mubr.msk.f32.mxu0 %vm265_vm1, %v5852_v2  ;;  %6599 = vst [vmem:[#allocation30_spill] sm:$0xff] %v5965_v62 }
  0x5e   : > { %4766 = vmatmul.mubr.msk.f32.gmra.mrb[4].mxu1 %vm265_vm1, %v5865_v3  ;;  %4990 = vmatmul.mubr.msk.f32.gmra.mrb[20].mxu0 %vm265_vm1, %v5868_v4 }
  0x5f   : > { %4768 = vmatprep.mubr.msk.f32.mxu1 %vm265_vm1, %v5871_v5  ;;  %4992 = vmatprep.mubr.msk.f32.mxu0 %vm265_vm1, %v5874_v6 }
  0x62   : > { %4769 = vmatmul.mubr.msk.f32.gmra.mrb[6].mxu1 %vm265_vm1, %v5885_v7  ;;  %4993 = vmatmul.mubr.msk.f32.gmra.mrb[22].mxu0 %vm265_vm1, %v5888_v9 }
  0x63   : > { %4771 = vmatprep.mubr.msk.f32.mxu1 %vm265_vm1, %v5891_v10  ;;  %4995 = vmatprep.mubr.msk.f32.mxu0 %vm265_vm1, %v5894_v55 }
  0x66   : > { %4772 = vmatmul.mubr.msk.f32.gmra.mrb[8].mxu1 %vm265_vm1, %v5905_v57  ;;  %4996 = vmatmul.mubr.msk.f32.gmra.mrb[24].mxu0 %vm265_vm1, %v5908_v53 }
  0x67   : > { %4774 = vmatprep.mubr.msk.f32.mxu1 %vm265_vm1, %v5911_v51  ;;  %4998 = vmatprep.mubr.msk.f32.mxu0 %vm265_vm1, %v5914_v49 }
  0x6a   : > { %4775 = vmatmul.mubr.msk.f32.gmra.mrb[10].mxu1 %vm265_vm1, %v5925_v47  ;;  %4999 = vmatmul.mubr.msk.f32.gmra.mrb[26].mxu0 %vm265_vm1, %v5928_v45 }
  0x6b   : > { %4777 = vmatprep.mubr.msk.f32.mxu1 %vm265_vm1, %v5931_v43  ;;  %5001 = vmatprep.mubr.msk.f32.mxu0 %vm265_vm1, %v5934_v41 }
  0x6e   : > { %4778 = vmatmul.mubr.msk.f32.gmra.mrb[12].mxu1 %vm265_vm1, %v5945_v39  ;;  %5002 = vmatmul.mubr.msk.f32.gmra.mrb[28].mxu0 %vm265_vm1, %v5948_v37  ;;  %v5990_v37 = vld [vmem:[%s6523_s1 + $0x20] sm:$0xf] }
  0x6f   : > { %4780 = vmatprep.mubr.msk.f32.mxu1 %vm265_vm1, %v5951_v35  ;;  %5004 = vmatprep.mubr.msk.f32.mxu0 %vm265_vm1, %v5954_v33  ;;  %v5982_v33 = vld [vmem:[%s5530_s27 + $0x88] sm:$0xff] }
  0x70   : > { %6601 = vst [vmem:[#allocation32_spill] sm:$0xff] %v5982_v33 }
  0x72   : > { %4781 = vmatmul.mubr.msk.f32.gmra.mrb[14].mxu1 %vm265_vm1, %v5965_v62  ;;  %5005 = vmatmul.mubr.msk.f32.gmra.mrb[30].mxu0 %vm265_vm1, %v5968_v31  ;;  %v6001_v31 = vld [vmem:[%s5530_s27 + $0x98] sm:$0xff] }
  0x73   : > { %4783 = vmatprep.mubr.msk.f32.mxu1 %vm265_vm1, %v5971_v59  ;;  %5009 = vmatprep.mubr.msk.f32.mxu0 %vm265_vm1, %v5849_v0  ;;  %v6006_v0 = vld [vmem:[%s5530_s27 + $0xa0] sm:$0xff] }
  0x76   : > { %4784 = vmatmul.mubr.msk.f32.gmra.mrb[16].mxu1 %vm265_vm1, %v5982_v33  ;;  %5010 = vmatmul.mubr.msk.f32.vlgmr.msra.gmra.mrb[0].mxu0 %vm265_vm1, %v5865_v3  ;;  %v3944_v3 = vld [vmem:[%s5530_s27 + $0x2] sm:$0xff] }
  0x77   : > { %5058 = vmatpush3.msk.msra.mxu0 %vm362_vm0, %v5668_v28  ;;  %4786 = vmatprep.mubr.msk.f32.mxu1 %vm265_vm1, %v5985_v29  ;;  %v6019_v28 = vld [vmem:[%s5530_s27 + $0xa8] sm:$0xff] }
  0x78   : > { %5012 = vmatprep.mubr.msk.f32.mxu0 %vm265_vm1, %v5871_v5  ;;  %5107 = vmatprep.subr.msk.mxu0 %vm362_vm0, %v5990_v37  ;;  %v6022_v5 = vld [vmem:[%s5530_s27 + $0xb0] sm:$0xff] }
  0x7a   : > { %4787 = vmatmul.mubr.msk.f32.gmra.mrb[18].mxu1 %vm265_vm1, %v6001_v31  ;;  %5013 = vmatmul.mubr.msk.f32.gmra.mrb[2].mxu0 %vm265_vm1, %v5885_v7  ;;  %v6033_v7 = vld [vmem:[%s5530_s27 + $0xb8] sm:$0xff] }
  0x7b   : > { %4789 = vmatprep.mubr.msk.f32.mxu1 %vm265_vm1, %v6006_v0  ;;  %5015 = vmatprep.mubr.msk.f32.mxu0 %vm265_vm1, %v5891_v10  ;;  %v6036_v10 = vld [vmem:[%s5530_s27 + $0xc0] sm:$0xff] }
  0x7e   : > { %4790 = vmatmul.mubr.msk.f32.gmra.mrb[20].mxu1 %vm265_vm1, %v6019_v28  ;;  %5016 = vmatmul.mubr.msk.f32.gmra.mrb[4].mxu0 %vm265_vm1, %v5905_v57  ;;  %v6047_v57 = vld [vmem:[%s5530_s27 + $0xc8] sm:$0xff] }
  0x7f   : > { %4792 = vmatprep.mubr.msk.f32.mxu1 %vm265_vm1, %v6022_v5  ;;  %5018 = vmatprep.mubr.msk.f32.mxu0 %vm265_vm1, %v5911_v51  ;;  %v6050_v51 = vld [vmem:[%s5530_s27 + $0xd0] sm:$0xff] }
  0x82   : > { %4793 = vmatmul.mubr.msk.f32.gmra.mrb[22].mxu1 %vm265_vm1, %v6033_v7  ;;  %5019 = vmatmul.mubr.msk.f32.gmra.mrb[6].mxu0 %vm265_vm1, %v5925_v47  ;;  %v6061_v47 = vld [vmem:[%s5530_s27 + $0xd8] sm:$0xff] }
  0x83   : > { %4795 = vmatprep.mubr.msk.f32.mxu1 %vm265_vm1, %v6036_v10  ;;  %5021 = vmatprep.mubr.msk.f32.mxu0 %vm265_vm1, %v5931_v43  ;;  %v6064_v43 = vld [vmem:[%s5530_s27 + $0xe0] sm:$0xff] }
  0x86   : > { %4796 = vmatmul.mubr.msk.f32.gmra.mrb[24].mxu1 %vm265_vm1, %v6047_v57  ;;  %5022 = vmatmul.mubr.msk.f32.gmra.mrb[8].mxu0 %vm265_vm1, %v5945_v39  ;;  %v6075_v39 = vld [vmem:[%s5530_s27 + $0xe8] sm:$0xff] }
  0x87   : > { %4798 = vmatprep.mubr.msk.f32.mxu1 %vm265_vm1, %v6050_v51  ;;  %5024 = vmatprep.mubr.msk.f32.mxu0 %vm265_vm1, %v5951_v35  ;;  %v6078_v35 = vld [vmem:[%s5530_s27 + $0xf0] sm:$0xff] }
  0x8a   : > { %4799 = vmatmul.mubr.msk.f32.gmra.mrb[26].mxu1 %vm265_vm1, %v6061_v47  ;;  %5025 = vmatmul.mubr.msk.f32.gmra.mrb[10].mxu0 %vm265_vm1, %v5965_v62  ;;  %v6089_v62 = vld [vmem:[%s5530_s27 + $0xf8] sm:$0xff] }
  0x8b   : > { %4801 = vmatprep.mubr.msk.f32.mxu1 %vm265_vm1, %v6064_v43  ;;  %5027 = vmatprep.mubr.msk.f32.mxu0 %vm265_vm1, %v5971_v59 }
  0x8e   : > { %4802 = vmatmul.mubr.msk.f32.gmra.mrb[28].mxu1 %vm265_vm1, %v6075_v39  ;;  %5028 = vmatmul.mubr.msk.f32.gmra.mrb[12].mxu0 %vm265_vm1, %v5982_v33  ;;  %v3945_v33 = vld [vmem:[%s5530_s27 + $0xa] sm:$0xff] }
  0x8f   : > { %4804 = vmatprep.mubr.msk.f32.mxu1 %vm265_vm1, %v6078_v35  ;;  %5030 = vmatprep.mubr.msk.f32.mxu0 %vm265_vm1, %v5985_v29 }
  0x92   : > { %4805 = vmatmul.mubr.msk.f32.gmra.mrb[30].mxu1 %vm265_vm1, %v6089_v62  ;;  %5031 = vmatmul.mubr.msk.f32.gmra.mrb[14].mxu0 %vm265_vm1, %v6001_v31 }
  0x93   : > { %4809 = vmatprep.mubr.msk.f32.mxu1 %vm265_vm1, %v3944_v3  ;;  %5033 = vmatprep.mubr.msk.f32.mxu0 %vm265_vm1, %v6006_v0  ;;  %v6618_v3 = vld [vmem:[#allocation22_spill] sm:$0xff] }
  0x96   : > { %4810 = vmatmul.mubr.msk.f32.vlgmr.msra.gmra.mrb[0].mxu1 %vm265_vm1, %v3945_v33  ;;  %5034 = vmatmul.mubr.msk.f32.gmra.mrb[16].mxu0 %vm265_vm1, %v6019_v28  ;;  %v4238_v33 = vld [vmem:[%s5530_s27 + $0x110] sm:$0xff] }
  0x97   : > { %4858 = vmatpush3.msk.msra.mxu1 %vm362_vm0, %v5831_v61  ;;  %4812 = vmatprep.mubr.msk.f32.mxu1 %vm265_vm1, %v5646_v24  ;;  %v6144_v24 = vld [vmem:[%s5530_s27 + $0x100] sm:$0xff]  ;;  %v4239_v61 = vld [vmem:[%s5530_s27 + $0x118] sm:$0xff] }
  0x98   : > { %5036 = vmatprep.mubr.msk.f32.mxu0 %vm265_vm1, %v6022_v5  ;;  %5157 = vmatprep.subr.msk.mxu1 %vm362_vm0, %v5508_v1 }
  0x9a   : > { %4813 = vmatmul.mubr.msk.f32.gmra.mrb[2].mxu1 %vm265_vm1, %v5657_v25  ;;  %5037 = vmatmul.mubr.msk.f32.gmra.mrb[18].mxu0 %vm265_vm1, %v6033_v7  ;;  %v6155_v25 = vld [vmem:[%s5530_s27 + $0x108] sm:$0xff] }
  0x9b   : > { %4815 = vmatprep.mubr.msk.f32.mxu1 %vm265_vm1, %v5663_v27  ;;  %5039 = vmatprep.mubr.msk.f32.mxu0 %vm265_vm1, %v6036_v10 }
  0x9e   : > { %4816 = vmatmul.mubr.msk.f32.gmra.mrb[4].mxu1 %vm265_vm1, %v5681_v30  ;;  %5040 = vmatmul.mubr.msk.f32.gmra.mrb[20].mxu0 %vm265_vm1, %v6047_v57 }
  0x9f   : > { %4818 = vmatprep.mubr.msk.f32.mxu1 %vm265_vm1, %v5689_v32  ;;  %5042 = vmatprep.mubr.msk.f32.mxu0 %vm265_vm1, %v6050_v51 }
  0xa2   : > { %4819 = vmatmul.mubr.msk.f32.gmra.mrb[6].mxu1 %vm265_vm1, %v5705_v34  ;;  %5043 = vmatmul.mubr.msk.f32.gmra.mrb[22].mxu0 %vm265_vm1, %v6061_v47 }
  0xa3   : > { %4821 = vmatprep.mubr.msk.f32.mxu1 %vm265_vm1, %v5711_v36  ;;  %5045 = vmatprep.mubr.msk.f32.mxu0 %vm265_vm1, %v6064_v43 }
  0xa6   : > { %4822 = vmatmul.mubr.msk.f32.gmra.mrb[8].mxu1 %vm265_vm1, %v5725_v38  ;;  %5046 = vmatmul.mubr.msk.f32.gmra.mrb[24].mxu0 %vm265_vm1, %v6075_v39 }
  0xa7   : > { %4824 = vmatprep.mubr.msk.f32.mxu1 %vm265_vm1, %v5731_v40  ;;  %5048 = vmatprep.mubr.msk.f32.mxu0 %vm265_vm1, %v6078_v35 }
  0xaa   : > { %4825 = vmatmul.mubr.msk.f32.gmra.mrb[10].mxu1 %vm265_vm1, %v5745_v42  ;;  %5049 = vmatmul.mubr.msk.f32.gmra.mrb[26].mxu0 %vm265_vm1, %v6089_v62 }
  0xab   : > { %4827 = vmatprep.mubr.msk.f32.mxu1 %vm265_vm1, %v5751_v44  ;;  %5051 = vmatprep.mubr.msk.f32.mxu0 %vm265_vm1, %v6144_v24 }
  0xae   : > { %4828 = vmatmul.mubr.msk.f32.gmra.mrb[12].mxu1 %vm265_vm1, %v5765_v46  ;;  %5052 = vmatmul.mubr.msk.f32.gmra.mrb[28].mxu0 %vm265_vm1, %v6155_v25 }
  0xaf   : > { %4830 = vmatprep.mubr.msk.f32.mxu1 %vm265_vm1, %v5771_v48  ;;  %5054 = vmatprep.mubr.msk.f32.mxu0 %vm265_vm1, %v4238_v33  ;;  %v6619_v33 = vld [vmem:[#allocation10_spill] sm:$0xff] }
  0xb2   : > { %4831 = vmatmul.mubr.msk.f32.gmra.mrb[14].mxu1 %vm265_vm1, %v5785_v50  ;;  %5055 = vmatmul.mubr.msk.f32.gmra.mrb[30].mxu0 %vm265_vm1, %v4239_v61  ;;  %v6620_v61 = vld [vmem:[#allocation23_spill] sm:$0xff] }
  0xb3   : > { %4833 = vmatprep.mubr.msk.f32.mxu1 %vm265_vm1, %v5791_v52  ;;  %5059 = vmatprep.mubr.msk.f32.mxu0 %vm265_vm1, %v5539_v8  ;;  %v6602_v8 = vld [vmem:[#allocation27_spill] sm:$0xff] }
  0xb6   : > { %4834 = vmatmul.mubr.msk.f32.gmra.mrb[16].mxu1 %vm265_vm1, %v5805_v54  ;;  %5060 = vmatmul.mubr.msk.f32.vlgmr.msra.gmra.mrb[0].mxu0 %vm265_vm1, %v5554_v11  ;;  %v6603_v11 = vld [vmem:[#allocation2_spill] sm:$0xff] }
  0xb7   : > { %5108 = vmatpush3.msk.msra.mxu0 %vm362_vm0, %v5990_v37  ;;  %4836 = vmatprep.mubr.msk.f32.mxu1 %vm265_vm1, %v5809_v56  ;;  %v6617_v37 = vld [vmem:[#allocation9_spill] sm:$0xff] }
  0xb8   : > { %5062 = vmatprep.mubr.msk.f32.mxu0 %vm265_vm1, %v5560_v12  ;;  %v6604_v12 = vld [vmem:[#allocation15_spill] sm:$0xff] }
  0xba   : > { %4837 = vmatmul.mubr.msk.f32.gmra.mrb[18].mxu1 %vm265_vm1, %v5820_v58  ;;  %5063 = vmatmul.mubr.msk.f32.gmra.mrb[2].mxu0 %vm265_vm1, %v5573_v13  ;;  %v6605_v13 = vld [vmem:[#allocation3_spill] sm:$0xff] }
  0xbb   : > { %4839 = vmatprep.mubr.msk.f32.mxu1 %vm265_vm1, %v5826_v60  ;;  %5065 = vmatprep.mubr.msk.f32.mxu0 %vm265_vm1, %v5576_v14  ;;  %v6606_v14 = vld [vmem:[#allocation16_spill] sm:$0xff] }
  0xbe   : > { %4840 = vmatmul.mubr.msk.f32.gmra.mrb[20].mxu1 %vm265_vm1, %v5844_v63  ;;  %5066 = vmatmul.mubr.msk.f32.gmra.mrb[4].mxu0 %vm265_vm1, %v5587_v15  ;;  %v6607_v15 = vld [vmem:[#allocation4_spill] sm:$0xff] }
  0xbf   : > { %4842 = vmatprep.mubr.msk.f32.mxu1 %vm265_vm1, %v5852_v2  ;;  %5068 = vmatprep.mubr.msk.f32.mxu0 %vm265_vm1, %v5590_v16  ;;  %v6608_v16 = vld [vmem:[#allocation17_spill] sm:$0xff] }
  0xc2   : > { %4843 = vmatmul.mubr.msk.f32.gmra.mrb[22].mxu1 %vm265_vm1, %v5868_v4  ;;  %5069 = vmatmul.mubr.msk.f32.gmra.mrb[6].mxu0 %vm265_vm1, %v5601_v17  ;;  %v6609_v17 = vld [vmem:[#allocation5_spill] sm:$0xff] }
  0xc3   : > { %4845 = vmatprep.mubr.msk.f32.mxu1 %vm265_vm1, %v5874_v6  ;;  %5071 = vmatprep.mubr.msk.f32.mxu0 %vm265_vm1, %v5604_v18  ;;  %v6610_v18 = vld [vmem:[#allocation18_spill] sm:$0xff] }
  0xc6   : > { %4846 = vmatmul.mubr.msk.f32.gmra.mrb[24].mxu1 %vm265_vm1, %v5888_v9  ;;  %5072 = vmatmul.mubr.msk.f32.gmra.mrb[8].mxu0 %vm265_vm1, %v5615_v19  ;;  %v6611_v19 = vld [vmem:[#allocation6_spill] sm:$0xff] }
  0xc7   : > { %4848 = vmatprep.mubr.msk.f32.mxu1 %vm265_vm1, %v5894_v55  ;;  %5074 = vmatprep.mubr.msk.f32.mxu0 %vm265_vm1, %v5618_v20  ;;  %v6612_v20 = vld [vmem:[#allocation19_spill] sm:$0xff] }
  0xca   : > { %4849 = vmatmul.mubr.msk.f32.gmra.mrb[26].mxu1 %vm265_vm1, %v5908_v53  ;;  %5075 = vmatmul.mubr.msk.f32.gmra.mrb[10].mxu0 %vm265_vm1, %v5629_v21  ;;  %v6613_v21 = vld [vmem:[#allocation7_spill] sm:$0xff] }
  0xcb   : > { %4851 = vmatprep.mubr.msk.f32.mxu1 %vm265_vm1, %v5914_v49  ;;  %5077 = vmatprep.mubr.msk.f32.mxu0 %vm265_vm1, %v5632_v22  ;;  %v6615_v22 = vld [vmem:[#allocation8_spill] sm:$0xff] }
  0xce   : > { %4852 = vmatmul.mubr.msk.f32.gmra.mrb[28].mxu1 %vm265_vm1, %v5928_v45  ;;  %5078 = vmatmul.mubr.msk.f32.gmra.mrb[12].mxu0 %vm265_vm1, %v5643_v23  ;;  %v6616_v23 = vld [vmem:[#allocation21_spill] sm:$0xff] }
  0xcf   : > { %4854 = vmatprep.mubr.msk.f32.mxu1 %vm265_vm1, %v5934_v41  ;;  %5080 = vmatprep.mubr.msk.f32.mxu0 %vm265_vm1, %v5660_v26 }
  0xd2   : > { %4855 = vmatmul.mubr.msk.f32.gmra.mrb[30].mxu1 %vm265_vm1, %v6602_v8  ;;  %5081 = vmatmul.mubr.msk.f32.gmra.mrb[14].mxu0 %vm265_vm1, %v6603_v11  ;;  %v6629_v8 = vld [vmem:[#allocation30_spill] sm:$0xff] }
  0xd3   : > { %4859 = vmatprep.mubr.msk.f32.mxu1 %vm265_vm1, %v6604_v12  ;;  %5083 = vmatprep.mubr.msk.f32.mxu0 %vm265_vm1, %v6605_v13  ;;  %v6621_v12 = vld [vmem:[#allocation11_spill] sm:$0xff] }
  0xd6   : > { %4860 = vmatmul.mubr.msk.f32.vlgmr.msra.gmra.mrb[0].mxu1 %vm265_vm1, %v6606_v14  ;;  %5084 = vmatmul.mubr.msk.f32.gmra.mrb[16].mxu0 %vm265_vm1, %v6607_v15  ;;  %v6622_v14 = vld [vmem:[#allocation24_spill] sm:$0xff] }
  0xd7   : > { %5158 = vmatpush3.msk.msra.mxu1 %vm362_vm0, %v5508_v1  ;;  %4862 = vmatprep.mubr.msk.f32.mxu1 %vm265_vm1, %v6608_v16  ;;  %v6614_v1 = vld [vmem:[#allocation20_spill] sm:$0xff] }
  0xd8   : > { %5086 = vmatprep.mubr.msk.f32.mxu0 %vm265_vm1, %v6609_v17  ;;  %v6623_v16 = vld [vmem:[#allocation12_spill] sm:$0xff] }
  0xda   : > { %4863 = vmatmul.mubr.msk.f32.gmra.mrb[2].mxu1 %vm265_vm1, %v6610_v18  ;;  %5087 = vmatmul.mubr.msk.f32.gmra.mrb[18].mxu0 %vm265_vm1, %v6611_v19  ;;  %v6624_v18 = vld [vmem:[#allocation25_spill] sm:$0xff] }
  0xdb   : > { %4865 = vmatprep.mubr.msk.f32.mxu1 %vm265_vm1, %v6612_v20  ;;  %5089 = vmatprep.mubr.msk.f32.mxu0 %vm265_vm1, %v6613_v21  ;;  %v6625_v20 = vld [vmem:[#allocation13_spill] sm:$0xff] }
  0xde   : > { %4866 = vmatmul.mubr.msk.f32.gmra.mrb[4].mxu1 %vm265_vm1, %v6614_v1  ;;  %5090 = vmatmul.mubr.msk.f32.gmra.mrb[20].mxu0 %vm265_vm1, %v6615_v22  ;;  %v6282_v1 = vld [vmem:[%s5530_s27 + $0x101] sm:$0xff] }
  0xdf   : > { %4868 = vmatprep.mubr.msk.f32.mxu1 %vm265_vm1, %v6616_v23  ;;  %5092 = vmatprep.mubr.msk.f32.mxu0 %vm265_vm1, %v6617_v37  ;;  %v6626_v23 = vld [vmem:[#allocation26_spill] sm:$0xff] }
  0xe2   : > { %4869 = vmatmul.mubr.msk.f32.gmra.mrb[6].mxu1 %vm265_vm1, %v6618_v3  ;;  %5093 = vmatmul.mubr.msk.f32.gmra.mrb[22].mxu0 %vm265_vm1, %v6619_v33  ;;  %v6627_v3 = vld [vmem:[#allocation14_spill] sm:$0xff] }
  0xe3   : > { %4871 = vmatprep.mubr.msk.f32.mxu1 %vm265_vm1, %v6620_v61  ;;  %5095 = vmatprep.mubr.msk.f32.mxu0 %vm265_vm1, %v6621_v12  ;;  %v6628_v61 = vld [vmem:[#allocation28_spill] sm:$0xff] }
  0xe6   : > { %4872 = vmatmul.mubr.msk.f32.gmra.mrb[8].mxu1 %vm265_vm1, %v6622_v14  ;;  %5096 = vmatmul.mubr.msk.f32.gmra.mrb[24].mxu0 %vm265_vm1, %v6623_v16  ;;  %v6293_v14 = vld [vmem:[%s5530_s27 + $0x109] sm:$0xff] }
  0xe7   : > { %4874 = vmatprep.mubr.msk.f32.mxu1 %vm265_vm1, %v6624_v18  ;;  %5098 = vmatprep.mubr.msk.f32.mxu0 %vm265_vm1, %v6625_v20  ;;  %v4304_v18 = vld [vmem:[%s5530_s27 + $0x111] sm:$0xff] }
  0xea   : > { %4875 = vmatmul.mubr.msk.f32.gmra.mrb[10].mxu1 %vm265_vm1, %v6626_v23  ;;  %5099 = vmatmul.mubr.msk.f32.gmra.mrb[26].mxu0 %vm265_vm1, %v6627_v3  ;;  %v4305_v23 = vld [vmem:[%s5530_s27 + $0x119] sm:$0xff]  ;;  %v6630_v3 = vld [vmem:[#allocation32_spill] sm:$0xff] }
  0xeb   : > { %4877 = vmatprep.mubr.msk.f32.mxu1 %vm265_vm1, %v6628_v61  ;;  %5101 = vmatprep.mubr.msk.f32.mxu0 %vm265_vm1, %v6282_v1 }
  0xee   : > { %4878 = vmatmul.mubr.msk.f32.gmra.mrb[12].mxu1 %vm265_vm1, %v6629_v8  ;;  %5102 = vmatmul.mubr.msk.f32.gmra.mrb[28].mxu0 %vm265_vm1, %v6293_v14 }
  0xef   : > { %4880 = vmatprep.mubr.msk.f32.mxu1 %vm265_vm1, %v5971_v59  ;;  %5104 = vmatprep.mubr.msk.f32.mxu0 %vm265_vm1, %v4304_v18 }
  0xf2   : > { %4881 = vmatmul.mubr.msk.f32.gmra.mrb[14].mxu1 %vm265_vm1, %v6630_v3  ;;  %5105 = vmatmul.mubr.msk.f32.gmra.mrb[30].mxu0 %vm265_vm1, %v4305_v23 }
  0xf3   : > { %4883 = vmatprep.mubr.msk.f32.mxu1 %vm265_vm1, %v5985_v29  ;;  %5109 = vmatprep.mubr.msk.f32.mxu0 %vm265_vm1, %v5663_v27  ;;  %v6632_v27 = vld [vmem:[#allocation29_spill] sm:$0xff] }
  0xf4   : > { %v4370_v29 = vld [vmem:[%s5530_s27 + $0x112] sm:$0xff] }
  0xf6   : > { %4884 = vmatmul.mubr.msk.f32.gmra.mrb[16].mxu1 %vm265_vm1, %v6001_v31  ;;  %5110 = vmatmul.mubr.msk.f32.vlgmr.msra.gmra.mrb[0].mxu0 %vm265_vm1, %v5681_v30  ;;  %v6633_v30 = vld [vmem:[#allocation14_spill] sm:$0xff]  ;;  %v6634_v31 = vld [vmem:[#allocation31_spill] sm:$0xff] }
  0xf7   : > { %4886 = vmatprep.mubr.msk.f32.mxu1 %vm265_vm1, %v6006_v0  ;;  %5112 = vmatprep.mubr.msk.f32.mxu0 %vm265_vm1, %v5689_v32  ;;  %v4371_v32 = vld [vmem:[%s5530_s27 + $0x11a] sm:$0xff] }
  0xfa   : > { %4887 = vmatmul.mubr.msk.f32.gmra.mrb[18].mxu1 %vm265_vm1, %v6019_v28  ;;  %5113 = vmatmul.mubr.msk.f32.gmra.mrb[2].mxu0 %vm265_vm1, %v5705_v34 }
  0xfb   : > { %4889 = vmatprep.mubr.msk.f32.mxu1 %vm265_vm1, %v6022_v5  ;;  %5115 = vmatprep.mubr.msk.f32.mxu0 %vm265_vm1, %v5711_v36 }
  0xfe   : > { %4890 = vmatmul.mubr.msk.f32.gmra.mrb[20].mxu1 %vm265_vm1, %v6033_v7  ;;  %5116 = vmatmul.mubr.msk.f32.gmra.mrb[4].mxu0 %vm265_vm1, %v5725_v38 }
  0xff   : > { %4892 = vmatprep.mubr.msk.f32.mxu1 %vm265_vm1, %v6036_v10  ;;  %5118 = vmatprep.mubr.msk.f32.mxu0 %vm265_vm1, %v5731_v40 }
 0x102   : > { %4893 = vmatmul.mubr.msk.f32.gmra.mrb[22].mxu1 %vm265_vm1, %v6047_v57  ;;  %5119 = vmatmul.mubr.msk.f32.gmra.mrb[6].mxu0 %vm265_vm1, %v5745_v42 }
 0x103   : > { %4895 = vmatprep.mubr.msk.f32.mxu1 %vm265_vm1, %v6050_v51  ;;  %5121 = vmatprep.mubr.msk.f32.mxu0 %vm265_vm1, %v5751_v44 }
 0x106   : > { %4896 = vmatmul.mubr.msk.f32.gmra.mrb[24].mxu1 %vm265_vm1, %v6061_v47  ;;  %5122 = vmatmul.mubr.msk.f32.gmra.mrb[8].mxu0 %vm265_vm1, %v5765_v46 }
 0x107   : > { %4898 = vmatprep.mubr.msk.f32.mxu1 %vm265_vm1, %v6064_v43  ;;  %5124 = vmatprep.mubr.msk.f32.mxu0 %vm265_vm1, %v5771_v48 }
 0x10a   : > { %4899 = vmatmul.mubr.msk.f32.gmra.mrb[26].mxu1 %vm265_vm1, %v6075_v39  ;;  %5125 = vmatmul.mubr.msk.f32.gmra.mrb[10].mxu0 %vm265_vm1, %v5785_v50 }
 0x10b   : > { %4901 = vmatprep.mubr.msk.f32.mxu1 %vm265_vm1, %v6078_v35  ;;  %5127 = vmatprep.mubr.msk.f32.mxu0 %vm265_vm1, %v5791_v52  ;;  %v6441_v52 = vld [vmem:[%s6524_s2] ss:$0 sm:$0xff] }
 0x10e   : > { %4902 = vmatmul.mubr.msk.f32.gmra.mrb[28].mxu1 %vm265_vm1, %v6089_v62  ;;  %5128 = vmatmul.mubr.msk.f32.gmra.mrb[12].mxu0 %vm265_vm1, %v5805_v54 }
 0x10f   : > { %4904 = vmatprep.mubr.msk.f32.mxu1 %vm265_vm1, %v6144_v24  ;;  %5130 = vmatprep.mubr.msk.f32.mxu0 %vm265_vm1, %v5809_v56 }
 0x112   : > { %4905 = vmatmul.mubr.msk.f32.gmra.mrb[30].mxu1 %vm265_vm1, %v6155_v25  ;;  %5131 = vmatmul.mubr.msk.f32.gmra.mrb[14].mxu0 %vm265_vm1, %v5820_v58 }
 0x113   : > { %4933 = vmatprep.mubr.msk.f32.mxu1 %vm265_vm1, %v5660_v26  ;;  %5133 = vmatprep.mubr.msk.f32.mxu0 %vm265_vm1, %v5826_v60  ;;  %v6631_v26 = vld [vmem:[#allocation27_spill] sm:$0xff] }
 0x116   : > { %4934 = vmatmul.mubr.msk.f32.vlgmr.msra.gmra.mrb[16].mxu1 %vm265_vm1, %v6603_v11  ;;  %5134 = vmatmul.mubr.msk.f32.gmra.mrb[16].mxu0 %vm265_vm1, %v5844_v63 }
 0x117   : > { %4936 = vmatprep.mubr.msk.f32.mxu1 %vm265_vm1, %v6605_v13  ;;  %5136 = vmatprep.mubr.msk.f32.mxu0 %vm265_vm1, %v5852_v2 }
 0x11a   : > { %4937 = vmatmul.mubr.msk.f32.gmra.mrb[18].mxu1 %vm265_vm1, %v6607_v15  ;;  %5137 = vmatmul.mubr.msk.f32.gmra.mrb[18].mxu0 %vm265_vm1, %v5868_v4 }
 0x11b   : > { %4939 = vmatprep.mubr.msk.f32.mxu1 %vm265_vm1, %v6609_v17  ;;  %5139 = vmatprep.mubr.msk.f32.mxu0 %vm265_vm1, %v5874_v6 }
 0x11e   : > { %4940 = vmatmul.mubr.msk.f32.gmra.mrb[20].mxu1 %vm265_vm1, %v6611_v19  ;;  %5140 = vmatmul.mubr.msk.f32.gmra.mrb[20].mxu0 %vm265_vm1, %v5888_v9 }
 0x11f   : > { %4942 = vmatprep.mubr.msk.f32.mxu1 %vm265_vm1, %v6613_v21  ;;  %5142 = vmatprep.mubr.msk.f32.mxu0 %vm265_vm1, %v5894_v55 }
 0x122   : > { %4943 = vmatmul.mubr.msk.f32.gmra.mrb[22].mxu1 %vm265_vm1, %v6615_v22  ;;  %5143 = vmatmul.mubr.msk.f32.gmra.mrb[22].mxu0 %vm265_vm1, %v5908_v53 }
 0x123   : > { %4945 = vmatprep.mubr.msk.f32.mxu1 %vm265_vm1, %v6617_v37  ;;  %5145 = vmatprep.mubr.msk.f32.mxu0 %vm265_vm1, %v5914_v49 }
 0x126   : > { %4946 = vmatmul.mubr.msk.f32.gmra.mrb[24].mxu1 %vm265_vm1, %v6619_v33  ;;  %5146 = vmatmul.mubr.msk.f32.gmra.mrb[24].mxu0 %vm265_vm1, %v5928_v45 }
 0x127   : > { %4948 = vmatprep.mubr.msk.f32.mxu1 %vm265_vm1, %v6621_v12  ;;  %5148 = vmatprep.mubr.msk.f32.mxu0 %vm265_vm1, %v5934_v41 }
 0x12a   : > { %4949 = vmatmul.mubr.msk.f32.gmra.mrb[26].mxu1 %vm265_vm1, %v6623_v16  ;;  %5149 = vmatmul.mubr.msk.f32.gmra.mrb[26].mxu0 %vm265_vm1, %v6631_v26 }
 0x12b   : > { %4951 = vmatprep.mubr.msk.f32.mxu1 %vm265_vm1, %v6625_v20  ;;  %5151 = vmatprep.mubr.msk.f32.mxu0 %vm265_vm1, %v6632_v27 }
 0x12e   : > { %4952 = vmatmul.mubr.msk.f32.gmra.mrb[28].mxu1 %vm265_vm1, %v6633_v30  ;;  %5152 = vmatmul.mubr.msk.f32.gmra.mrb[28].mxu0 %vm265_vm1, %v6634_v31 }
 0x12f   : > { %4954 = vmatprep.mubr.msk.f32.mxu1 %vm265_vm1, %v6282_v1  ;;  %5154 = vmatprep.mubr.msk.f32.mxu0 %vm265_vm1, %v4370_v29 }
 0x132   : > { %4955 = vmatmul.mubr.msk.f32.gmra.mrb[30].mxu1 %vm265_vm1, %v6293_v14  ;;  %5155 = vmatmul.mubr.msk.f32.gmra.mrb[30].mxu0 %vm265_vm1, %v4371_v32 }
 0x1a9   : > { %v4861_v34 = vpop.f32.mrb[0].mxu1 }
 0x1aa   : > { %v1508_v35 = vpop.f32.mrb[1].mxu1 }
 0x1ad   : > { %v4864_v36 = vpop.f32.mrb[2].mxu1 }
 0x1ae   : > { %v1518_v38 = vpop.f32.mrb[3].mxu1 }
 0x1b1   : > { %v4867_v39 = vpop.f32.mrb[4].mxu1 }
 0x1b2   : > { %v1528_v40 = vpop.f32.mrb[5].mxu1 }
 0x1b5   : > { %v4870_v41 = vpop.f32.mrb[6].mxu1 }
 0x1b6   : > { %v1538_v42 = vpop.f32.mrb[7].mxu1 }
 0x1b9   : > { %v4873_v43 = vpop.f32.mrb[8].mxu1 }
 0x1ba   : > { %v1548_v44 = vpop.f32.mrb[9].mxu1 }
 0x1bd   : > { %v4876_v45 = vpop.f32.mrb[10].mxu1 }
 0x1be   : > { %v1558_v46 = vpop.f32.mrb[11].mxu1 }
 0x1c1   : > { %v4879_v47 = vpop.f32.mrb[12].mxu1 }
 0x1c2   : > { %v1568_v48 = vpop.f32.mrb[13].mxu1 }
 0x1c5   : > { %v4882_v49 = vpop.f32.mrb[14].mxu1 }
 0x1c6   : > { %v6435_v50 = vpop.f32.mrb[15].mxu1 }
 0x1c9   : > { %v5111_v51 = vpop.f32.mrb[0].mxu0 }
 0x1ca   : > { %v5159_v53 = vadd.f32 %v5111_v51, %v4861_v34  ;;  %v3468_v54 = vpop.f32.mrb[1].mxu0 }
 0x1cb   : > { %v5160_v56 = vadd.f32 %v3468_v54, %v1508_v35 }
 0x1cc   : > { %v3667_v58 = vadd.f32 %v5159_v53, %v6441_v52 }
 0x1cd   : > { %v3666_v59 = vadd.f32 %v5160_v56, %v6441_v52  ;;  %v5114_v60 = vpop.f32.mrb[2].mxu0 }
 0x1ce   : > { %3699 = vst [vmem:[%s6446_s20 + $0x8] sm:$0xff] %v3667_v58  ;;  %v5161_v62 = vadd.f32 %v5114_v60, %v4864_v36  ;;  %v3478_v63 = vpop.f32.mrb[3].mxu0 }
 0x1cf   : > { %3698 = vst [vmem:[%s6446_s20] sm:$0xff] %v3666_v59  ;;  %v5162_v0 = vadd.f32 %v3478_v63, %v1518_v38 }
 0x1d0   : > { %v3669_v2 = vadd.f32 %v5161_v62, %v6441_v52 }
 0x1d1   : > { %v3668_v4 = vadd.f32 %v5162_v0, %v6441_v52  ;;  %v5117_v5 = vpop.f32.mrb[4].mxu0 }
 0x1d2   : > { %3701 = vst [vmem:[%s6446_s20 + $0x18] sm:$0xff] %v3669_v2  ;;  %v5163_v6 = vadd.f32 %v5117_v5, %v4867_v39  ;;  %v3488_v7 = vpop.f32.mrb[5].mxu0 }
 0x1d3   : > { %3700 = vst [vmem:[%s6446_s20 + $0x10] sm:$0xff] %v3668_v4  ;;  %v5164_v9 = vadd.f32 %v3488_v7, %v1528_v40 }
 0x1d4   : > { %v3671_v10 = vadd.f32 %v5163_v6, %v6441_v52 }
 0x1d5   : > { %v3670_v55 = vadd.f32 %v5164_v9, %v6441_v52  ;;  %v5120_v57 = vpop.f32.mrb[6].mxu0 }
 0x1d6   : > { %3703 = vst [vmem:[%s6446_s20 + $0x28] sm:$0xff] %v3671_v10  ;;  %v5165_v28 = vadd.f32 %v5120_v57, %v4870_v41  ;;  %v3498_v24 = vpop.f32.mrb[7].mxu0 }
 0x1d7   : > { %3702 = vst [vmem:[%s6446_s20 + $0x20] sm:$0xff] %v3670_v55  ;;  %v5166_v25 = vadd.f32 %v3498_v24, %v1538_v42 }
 0x1d8   : > { %v3673_v8 = vadd.f32 %v5165_v28, %v6441_v52 }
 0x1d9   : > { %v3672_v11 = vadd.f32 %v5166_v25, %v6441_v52  ;;  %v5123_v13 = vpop.f32.mrb[8].mxu0 }
 0x1da   : > { %3705 = vst [vmem:[%s6446_s20 + $0x38] sm:$0xff] %v3673_v8  ;;  %v5167_v15 = vadd.f32 %v5123_v13, %v4873_v43  ;;  %v3508_v17 = vpop.f32.mrb[9].mxu0 }
 0x1db   : > { %3704 = vst [vmem:[%s6446_s20 + $0x30] sm:$0xff] %v3672_v11  ;;  %v5168_v19 = vadd.f32 %v3508_v17, %v1548_v44 }
 0x1dc   : > { %v3675_v21 = vadd.f32 %v5167_v15, %v6441_v52 }
 0x1dd   : > { %v3674_v22 = vadd.f32 %v5168_v19, %v6441_v52  ;;  %v5126_v37 = vpop.f32.mrb[10].mxu0 }
 0x1de   : > { %3707 = vst [vmem:[%s6446_s20 + $0x48] sm:$0xff] %v3675_v21  ;;  %v5169_v33 = vadd.f32 %v5126_v37, %v4876_v45  ;;  %v3518_v12 = vpop.f32.mrb[11].mxu0 }
 0x1df   : > { %3706 = vst [vmem:[%s6446_s20 + $0x40] sm:$0xff] %v3674_v22  ;;  %v5170_v16 = vadd.f32 %v3518_v12, %v1558_v46 }
 0x1e0   : > { %v3677_v20 = vadd.f32 %v5169_v33, %v6441_v52 }
 0x1e1   : > { %v3676_v1 = vadd.f32 %v5170_v16, %v6441_v52  ;;  %v5129_v3 = vpop.f32.mrb[12].mxu0 }
 0x1e2   : > { %3709 = vst [vmem:[%s6446_s20 + $0x58] sm:$0xff] %v3677_v20  ;;  %v5171_v61 = vadd.f32 %v5129_v3, %v4879_v47  ;;  %v3528_v14 = vpop.f32.mrb[13].mxu0 }
 0x1e3   : > { %3708 = vst [vmem:[%s6446_s20 + $0x50] sm:$0xff] %v3676_v1  ;;  %v5172_v18 = vadd.f32 %v3528_v14, %v1568_v48 }
 0x1e4   : > { %v3679_v23 = vadd.f32 %v5171_v61, %v6441_v52 }
 0x1e5   : > { %v3678_v26 = vadd.f32 %v5172_v18, %v6441_v52  ;;  %v5132_v27 = vpop.f32.mrb[14].mxu0 }
 0x1e6   : > { %3711 = vst [vmem:[%s6446_s20 + $0x68] sm:$0xff] %v3679_v23  ;;  %v5173_v29 = vadd.f32 %v5132_v27, %v4882_v49  ;;  %v3538_v30 = vpop.f32.mrb[15].mxu0 }
 0x1e7   : > { %3710 = vst [vmem:[%s6446_s20 + $0x60] sm:$0xff] %v3678_v26  ;;  %v5174_v31 = vadd.f32 %v3538_v30, %v6435_v50 }
 0x1e8   : > { %v3681_v32 = vadd.f32 %v5173_v29, %v6441_v52 }
 0x1e9   : > { %v3680_v34 = vadd.f32 %v5174_v31, %v6441_v52  ;;  %v4935_v35 = vpop.f32.mrb[16].mxu1  ;;  %v5135_v36 = vpop.f32.mrb[16].mxu0 }
 0x1ea   : > { %3713 = vst [vmem:[%s6446_s20 + $0x78] sm:$0xff] %v3681_v32  ;;  %v5175_v38 = vadd.f32 %v5135_v36, %v4935_v35  ;;  %v1980_v39 = vpop.f32.mrb[17].mxu1  ;;  %v3548_v40 = vpop.f32.mrb[17].mxu0 }
 0x1eb   : > { %3712 = vst [vmem:[%s6446_s20 + $0x70] sm:$0xff] %v3680_v34  ;;  %v5176_v41 = vadd.f32 %v3548_v40, %v1980_v39 }
 0x1ec   : > { %v3683_v42 = vadd.f32 %v5175_v38, %v6441_v52 }
 0x1ed   : > { %v3682_v43 = vadd.f32 %v5176_v41, %v6441_v52  ;;  %v4938_v44 = vpop.f32.mrb[18].mxu1  ;;  %v5138_v45 = vpop.f32.mrb[18].mxu0 }
 0x1ee   : > { %3715 = vst [vmem:[%s6446_s20 + $0x88] sm:$0xff] %v3683_v42  ;;  %v5177_v46 = vadd.f32 %v5138_v45, %v4938_v44  ;;  %v1990_v47 = vpop.f32.mrb[19].mxu1  ;;  %v3558_v48 = vpop.f32.mrb[19].mxu0 }
 0x1ef   : > { %3714 = vst [vmem:[%s6446_s20 + $0x80] sm:$0xff] %v3682_v43  ;;  %v5178_v49 = vadd.f32 %v3558_v48, %v1990_v47 }
 0x1f0   : > { %v3685_v50 = vadd.f32 %v5177_v46, %v6441_v52 }
 0x1f1   : > { %v3684_v51 = vadd.f32 %v5178_v49, %v6441_v52  ;;  %v4941_v53 = vpop.f32.mrb[20].mxu1  ;;  %v5141_v54 = vpop.f32.mrb[20].mxu0 }
 0x1f2   : > { %3717 = vst [vmem:[%s6446_s20 + $0x98] sm:$0xff] %v3685_v50  ;;  %v5179_v56 = vadd.f32 %v5141_v54, %v4941_v53  ;;  %v2000_v58 = vpop.f32.mrb[21].mxu1  ;;  %v3568_v59 = vpop.f32.mrb[21].mxu0 }
 0x1f3   : > { %3716 = vst [vmem:[%s6446_s20 + $0x90] sm:$0xff] %v3684_v51  ;;  %v5180_v60 = vadd.f32 %v3568_v59, %v2000_v58 }
 0x1f4   : > { %v3687_v62 = vadd.f32 %v5179_v56, %v6441_v52 }
 0x1f5   : > { %v3686_v63 = vadd.f32 %v5180_v60, %v6441_v52  ;;  %v4944_v0 = vpop.f32.mrb[22].mxu1  ;;  %v5144_v2 = vpop.f32.mrb[22].mxu0 }
 0x1f6   : > { %3719 = vst [vmem:[%s6446_s20 + $0xa8] sm:$0xff] %v3687_v62  ;;  %v5181_v4 = vadd.f32 %v5144_v2, %v4944_v0  ;;  %v2010_v5 = vpop.f32.mrb[23].mxu1  ;;  %v3578_v6 = vpop.f32.mrb[23].mxu0 }
 0x1f7   : > { %3718 = vst [vmem:[%s6446_s20 + $0xa0] sm:$0xff] %v3686_v63  ;;  %v5182_v7 = vadd.f32 %v3578_v6, %v2010_v5 }
 0x1f8   : > { %v3689_v9 = vadd.f32 %v5181_v4, %v6441_v52 }
 0x1f9   : > { %v3688_v10 = vadd.f32 %v5182_v7, %v6441_v52  ;;  %v4947_v55 = vpop.f32.mrb[24].mxu1  ;;  %v5147_v57 = vpop.f32.mrb[24].mxu0 }
 0x1fa   : > { %3721 = vst [vmem:[%s6446_s20 + $0xb8] sm:$0xff] %v3689_v9  ;;  %v5183_v28 = vadd.f32 %v5147_v57, %v4947_v55  ;;  %v2020_v24 = vpop.f32.mrb[25].mxu1  ;;  %v3588_v25 = vpop.f32.mrb[25].mxu0 }
 0x1fb   : > { %3720 = vst [vmem:[%s6446_s20 + $0xb0] sm:$0xff] %v3688_v10  ;;  %v5184_v8 = vadd.f32 %v3588_v25, %v2020_v24 }
 0x1fc   : > { %v3691_v11 = vadd.f32 %v5183_v28, %v6441_v52 }
 0x1fd   : > { %v3690_v13 = vadd.f32 %v5184_v8, %v6441_v52  ;;  %v4950_v15 = vpop.f32.mrb[26].mxu1  ;;  %v5150_v17 = vpop.f32.mrb[26].mxu0 }
 0x1fe   : > { %3723 = vst [vmem:[%s6446_s20 + $0xc8] sm:$0xff] %v3691_v11  ;;  %v5185_v19 = vadd.f32 %v5150_v17, %v4950_v15  ;;  %v2030_v21 = vpop.f32.mrb[27].mxu1  ;;  %v3598_v22 = vpop.f32.mrb[27].mxu0 }
 0x1ff   : > { %3722 = vst [vmem:[%s6446_s20 + $0xc0] sm:$0xff] %v3690_v13  ;;  %v5186_v37 = vadd.f32 %v3598_v22, %v2030_v21 }
 0x200   : > { %v3693_v33 = vadd.f32 %v5185_v19, %v6441_v52 }
 0x201   : > { %v3692_v12 = vadd.f32 %v5186_v37, %v6441_v52  ;;  %v4953_v16 = vpop.f32.mrb[28].mxu1  ;;  %v5153_v20 = vpop.f32.mrb[28].mxu0 }
 0x202   : > { %3725 = vst [vmem:[%s6446_s20 + $0xd8] sm:$0xff] %v3693_v33  ;;  %v5187_v1 = vadd.f32 %v5153_v20, %v4953_v16  ;;  %v2040_v3 = vpop.f32.mrb[29].mxu1  ;;  %v3608_v61 = vpop.f32.mrb[29].mxu0 }
 0x203   : > { %3724 = vst [vmem:[%s6446_s20 + $0xd0] sm:$0xff] %v3692_v12  ;;  %v5188_v14 = vadd.f32 %v3608_v61, %v2040_v3 }
 0x204   : > { %v3695_v18 = vadd.f32 %v5187_v1, %v6441_v52 }
 0x205   : > { %v3694_v23 = vadd.f32 %v5188_v14, %v6441_v52  ;;  %v4956_v26 = vpop.f32.mrb[30].mxu1  ;;  %v5156_v27 = vpop.f32.mrb[30].mxu0 }
 0x206   : > { %3727 = vst [vmem:[%s6446_s20 + $0xe8] sm:$0xff] %v3695_v18  ;;  %v5189_v29 = vadd.f32 %v5156_v27, %v4956_v26  ;;  %v2050_v30 = vpop.f32.mrb[31].mxu1  ;;  %v3618_v31 = vpop.f32.mrb[31].mxu0 }
 0x207   : > { %3726 = vst [vmem:[%s6446_s20 + $0xe0] sm:$0xff] %v3694_v23  ;;  %v5190_v32 = vadd.f32 %v3618_v31, %v2050_v30 }
 0x208   : > { %v3697_v34 = vadd.f32 %v5189_v29, %v6441_v52 }
 0x209   : > { %v3696_v35 = vadd.f32 %v5190_v32, %v6441_v52 }
 0x20a   : > { %3729 = vst [vmem:[%s6446_s20 + $0xf8] sm:$0xff] %v3697_v34 }
 0x20b   : > { %3728 = vst [vmem:[%s6446_s20 + $0xf0] sm:$0xff] %v3696_v35 }
 0x20c PF: > { %s13_s14 = sadd.s32 1, %s5462_s14   ;;  %s6635_s12 = smov %s5458_s13 }
 0x20d   : > { %p10_p5 = scmp.ge.s32.totalorder %s13_s14, 4   ;;  %s6636_s13 = smov %s6638_s15 }
 0x20f   :  { %12 = sbr.rel (!%p10_p5) target bundleno = 2 (0x2), region = 79 }

</bundles_post_ra>
